<compile_context>
chip_gen: v7x
topology: tpu7x:2x2x1
jax: 0.10.0
libtpu: 0.0.40
codegen_flags: <defaults>
</compile_context>

<pallas_src>
import functools

import jax
import jax.numpy as jnp
from jax import lax
from jax.experimental import pallas as pl
from jax.experimental.pallas import tpu as pltpu

_SUB = 16  # sublane alignment for the bf16 gate slab (bf16 tiles are (16,128))


def _round_up(x, m):
    return (x + m - 1) // m * m


def _num_tensorcores():
    """Best-effort TensorCore count (1 on v5e/v6e, 2 on v7x); falls back to 1."""
    try:
        info = pltpu.get_tpu_info()
        for name in ("num_cores", "num_tensorcores", "tensorcore_count",
                     "cores_per_chip", "core_count"):
            v = getattr(info, name, None)
            if isinstance(v, int) and 1 <= v <= 16:
                return min(v, 2)
        cv = getattr(info, "chip_version", None)
        if cv is not None and "7" in str(cv):
            return 2
    except Exception:
        pass
    return 1


_DEFAULT_TENSORCORES = _num_tensorcores()


# ----------------------------------- kernel -----------------------------------
def _tpse_kernel(xcol_ref, wconv_ref, wihf_ref, whhrz_ref, whhn_ref, wihb_ref,
                 wfc_ref, bgate_ref, bmisc_ref, out_ref, gates_ref, h_ref):
    f32, bf16 = jnp.float32, jnp.bfloat16
    R = xcol_ref.shape[1]           # chunk rows = TC * NBp (time-major)
    NBp = h_ref.shape[0]            # sublane-padded batch rows per block
    Hp = h_ref.shape[1]             # lane-padded hidden width (x128)
    TC = R // NBp                   # timesteps in this chunk
    c = pl.program_id(1)

    # Reset the carried hidden state at the first time chunk of each block.
    @pl.when(c == 0)
    def _():
        h_ref[...] = jnp.zeros_like(h_ref)

    # ---- Conv1d(k=3, SAME, bias=False) + folded BN + ReLU: one matmul -------
    hconv = jnp.dot(xcol_ref[0], wconv_ref[...], preferred_element_type=f32)
    hconv = jnp.maximum(hconv + bmisc_ref[0:1, :], 0.0)            # (R, Hp)
    hconv_bf = hconv.astype(bf16)

    # ---- forward-GRU input-gate projections for this chunk (hoisted), bf16 --
    gates_ref[...] = (jnp.dot(hconv_bf, wihf_ref[...], preferred_element_type=f32)
                      + bgate_ref[0:1, :]).astype(bf16)            # (R, 3Hp)

    # Hoist the (1,Hp)->(NBp,Hp) broadcast out of the recurrence loop.
    b_hn = jnp.broadcast_to(bmisc_ref[1:2, :], (NBp, Hp))

    # ---- forward-GRU recurrence: split hidden matmul + elementwise per step -
    def gru_step(t, h):
        start = pl.multiple_of(t * NBp, NBp)                       # NBp % 16 == 0
        g = gates_ref[pl.ds(start, NBp), :].astype(f32)            # (NBp, 3Hp)
        h_bf = h.astype(bf16)
        hh_rz = jnp.dot(h_bf, whhrz_ref[...], preferred_element_type=f32)
        hh_n = jnp.dot(h_bf, whhn_ref[...], preferred_element_type=f32)
        r = jax.nn.sigmoid(g[:, :Hp] + hh_rz[:, :Hp])
        z = jax.nn.sigmoid(g[:, Hp:2 * Hp] + hh_rz[:, Hp:])
        n = jnp.tanh(g[:, 2 * Hp:] + r * (hh_n + b_hn))
        return (1.0 - z) * n + z * h

    h_ref[...] = lax.fori_loop(0, TC, gru_step, h_ref[...], unroll=min(TC, 8))

    # ---- last chunk: backward-GRU first step + fc + tanh, write output ------
    @pl.when(c == pl.num_programs(1) - 1)
    def _():
        h_fwd = h_ref[...]
        # out[:, -1, H:] of a bidirectional GRU is the backward direction's
        # FIRST step (h0 == 0) on x_{Tx-1}.
        x_last = hconv_bf[(TC - 1) * NBp:, :]                      # (NBp, Hp)
        gb = (jnp.dot(x_last, wihb_ref[...], preferred_element_type=f32)
              + bgate_ref[1:2, :])                                 # (NBp, 3Hp)
        r_b = jax.nn.sigmoid(gb[:, :Hp])
        z_b = jax.nn.sigmoid(gb[:, Hp:2 * Hp])
        n_b = jnp.tanh(gb[:, 2 * Hp:] + r_b * bmisc_ref[2:3, :])
        h_bwd = (1.0 - z_b) * n_b                                  # + z_b * 0
        hcat = jnp.concatenate([h_fwd, h_bwd], axis=-1).astype(bf16)
        y = (jnp.dot(hcat, wfc_ref[...], preferred_element_type=f32)
             + bmisc_ref[3:4, :])
        out_ref[0] = jnp.tanh(y)


# ------------------------------ parameter setup --------------------------------
def init_params(key, text_dims, style_dims):
    H, E = style_dims, text_dims
    ks = jax.random.split(key, 16)
    rnd = lambda k, shape, s=0.1: s * jax.random.normal(k, shape, jnp.float32)
    return dict(
        conv_w=rnd(ks[0], (H, E, 3)),                 # PyTorch Conv1d (out, in, k)
        bn_gamma=1.0 + 0.1 * jax.random.normal(ks[1], (H,), jnp.float32),
        bn_beta=rnd(ks[2], (H,)),
        bn_mean=rnd(ks[3], (H,)),
        bn_var=jnp.abs(1.0 + 0.1 * jax.random.normal(ks[4], (H,), jnp.float32)),
        w_ih_f=rnd(ks[5], (3 * H, H)), w_hh_f=rnd(ks[6], (3 * H, H)),
        b_ih_f=rnd(ks[7], (3 * H,)), b_hh_f=rnd(ks[8], (3 * H,)),
        w_ih_b=rnd(ks[9], (3 * H, H)), w_hh_b=rnd(ks[10], (3 * H, H)),
        b_ih_b=rnd(ks[11], (3 * H,)), b_hh_b=rnd(ks[12], (3 * H,)),
        fc_w=rnd(ks[13], (H, 2 * H)), fc_b=rnd(ks[14], (H,)),
    )


def pack_params(p, text_dims, style_dims, eps=1e-5):
    """Fold BN, fuse gate/conv/fc weights, zero-pad hidden dims to 128 lanes."""
    E, H = text_dims, style_dims
    Hp = _round_up(H, 128)
    K3 = 3 * E

    def pad2(a, r, c):
        return jnp.pad(a, ((0, r - a.shape[0]), (0, c - a.shape[1])))

    def pad1(v):
        return jnp.pad(v, (0, Hp - H))

    # eval-mode BN fold: y = scale*conv(x) + shift
    scale = p['bn_gamma'] / jnp.sqrt(p['bn_var'] + eps)
    shift = p['bn_beta'] - p['bn_mean'] * scale
    w = jnp.transpose(p['conv_w'] * scale[:, None, None], (2, 1, 0))   # (3, E, H)
    wconv = pad2(w.reshape(K3, H), K3, Hp).astype(jnp.bfloat16)        # (3E, Hp)

    def gates_xW(w3h):   # PyTorch (3H, H) rows [r; z; n] -> (Hp, 3Hp) for x @ W
        blocks = w3h.reshape(3, H, H)
        return jnp.concatenate([pad2(blocks[i].T, Hp, Hp) for i in range(3)],
                               axis=1)

    w_ih_f = gates_xW(p['w_ih_f']).astype(jnp.bfloat16)                # (Hp, 3Hp)
    w_ih_b = gates_xW(p['w_ih_b']).astype(jnp.bfloat16)                # (Hp, 3Hp)
    w_hh_f = gates_xW(p['w_hh_f'])
    w_hh_rz = w_hh_f[:, :2 * Hp].astype(jnp.bfloat16)                  # (Hp, 2Hp)
    w_hh_n = w_hh_f[:, 2 * Hp:].astype(jnp.bfloat16)                   # (Hp, Hp)
    # W_hh of the backward GRU is unused: its output at t = Tx-1 is its first
    # step with h0 == 0; only its biases survive.

    wfc = jnp.concatenate([pad2(p['fc_w'][:, :H].T, Hp, Hp),
                           pad2(p['fc_w'][:, H:].T, Hp, Hp)],
                          axis=0).astype(jnp.bfloat16)                 # (2Hp, Hp)

    bih_f, bhh_f = p['b_ih_f'].reshape(3, H), p['b_hh_f'].reshape(3, H)
    bih_b, bhh_b = p['b_ih_b'].reshape(3, H), p['b_hh_b'].reshape(3, H)
    bgate = jnp.stack([
        jnp.concatenate([pad1(bih_f[0] + bhh_f[0]),
                         pad1(bih_f[1] + bhh_f[1]),
                         pad1(bih_f[2])]),
        jnp.concatenate([pad1(bih_b[0] + bhh_b[0]),
                         pad1(bih_b[1] + bhh_b[1]),
                         pad1(bih_b[2])]),
    ]).astype(jnp.float32)                                             # (2, 3Hp)

    bmisc = jnp.stack([pad1(shift),        # conv/BN shift
                       pad1(bhh_f[2]),     # b_hn forward (inside r*(.))
                       pad1(bhh_b[2]),     # b_hn backward
                       pad1(p['fc_b'])]).astype(jnp.float32)           # (4, Hp)

    return (wconv, w_ih_f, w_hh_rz, w_hh_n, w_ih_b, wfc, bgate, bmisc)


# ----------------------------------- wrapper -----------------------------------
@functools.partial(jax.jit,
                   static_argnames=("style_dims", "batch_blocks", "time_chunk"))
def tpse_forward(text_embedding, packed, style_dims, batch_blocks=None,
                 time_chunk=None):
    wconv, wihf, whhrz, whhn, wihb, wfc, bgate, bmisc = packed
    N, Tx, E = text_embedding.shape
    H = style_dims
    Hp = bmisc.shape[1]
    K3 = wconv.shape[0]

    # --- core-count-aware batch split (extra grid steps serialize on 1-TC chips)
    if batch_blocks is not None:
        G = batch_blocks
    else:
        cores = _DEFAULT_TENSORCORES
        G = cores if (cores > 1 and N % cores == 0) else 1
    assert N % G == 0, "batch must divide evenly into batch_blocks"
    NB = N // G
    NBp = _round_up(NB, _SUB)          # sublane-pad batch rows within a block

    # --- time chunking: keep per-chunk VMEM O(chunk), not O(Tx) ---------------
    per_row = K3 * 4 + 3 * Hp * 2 + Hp * 6   # 2x-buffered cols + bf16 gates + temps
    max_tc = max(1, (12 << 20) // (per_row * NBp))
    if time_chunk is not None:
        TC = time_chunk
        assert Tx % TC == 0
    else:
        TC = 1
        for d in range(1, Tx + 1):
            if Tx % d == 0 and d <= max_tc:
                TC = d
    NC = Tx // TC

    # --- im2col slab, time-major within each batch block: (G, Tx*NBp, 3E) bf16
    xp = jnp.pad(text_embedding, ((0, 0), (1, 1), (0, 0)))
    cols = jnp.concatenate([xp[:, 0:Tx], xp[:, 1:Tx + 1], xp[:, 2:Tx + 2]],
                           axis=-1)                                    # (N, Tx, 3E)
    cols = cols.reshape(G, NB, Tx, K3)
    if NBp != NB:
        cols = jnp.pad(cols, ((0, 0), (0, NBp - NB), (0, 0), (0, 0)))
    cols = (cols.transpose(0, 2, 1, 3)
            .reshape(G, Tx * NBp, K3).astype(jnp.bfloat16))

    def full(shape):
        zeros = (0,) * len(shape)
        return pl.BlockSpec(shape, lambda g, c: zeros)

    # --- explicit VMEM ceiling with headroom (v7x has 64 MiB physical / TC) ---
    wbytes = sum(int(a.size) * a.dtype.itemsize
                 for a in (wconv, wihf, whhrz, whhn, wihb, wfc, bgate, bmisc))
    est = TC * NBp * per_row + 2 * wbytes + NBp * Hp * 16
    vmem_limit = int(min(max(2 * est + (16 << 20), 32 << 20), 64 << 20))

    out = pl.pallas_call(
        _tpse_kernel,
        out_shape=jax.ShapeDtypeStruct((G, NBp, Hp), jnp.float32),
        grid=(G, NC),
        in_specs=[
            pl.BlockSpec((1, TC * NBp, K3), lambda g, c: (g, c, 0)),
            full(wconv.shape), full(wihf.shape), full(whhrz.shape),
            full(whhn.shape), full(wihb.shape), full(wfc.shape),
            full(bgate.shape), full(bmisc.shape),
        ],
        out_specs=pl.BlockSpec((1, NBp, Hp), lambda g, c: (g, 0, 0)),
        scratch_shapes=[pltpu.VMEM((TC * NBp, 3 * Hp), jnp.bfloat16),
                        pltpu.VMEM((NBp, Hp), jnp.float32)],
        compiler_params=pltpu.CompilerParams(
            dimension_semantics=("parallel", "arbitrary"),
            vmem_limit_bytes=vmem_limit),
    )(cols, wconv, wihf, whhrz, whhn, wihb, wfc, bgate, bmisc)

    # Strip batch/lane padding and restore the PyTorch output shape (N, 1, H).
    return out[:, :NB, :H].reshape(N, 1, H)


# ------------------------------ pure-JAX reference -----------------------------
def _reference_forward(x, p, H, eps=1e-5):
    N, Tx, E = x.shape
    scale = p['bn_gamma'] / jnp.sqrt(p['bn_var'] + eps)
    shift = p['bn_beta'] - p['bn_mean'] * scale
    xp = jnp.pad(x, ((0, 0), (1, 1), (0, 0)))
    w = p['conv_w']                                              # (H, E, 3)
    h = sum(jnp.einsum('nte,he->nth', xp[:, k:k + Tx], w[:, :, k])
            for k in range(3))
    h = jnp.maximum(h * scale + shift, 0.0)                      # (N, Tx, H)

    def gru_dir(h_seq, w_ih, w_hh, b_ih, b_hh):
        wir, wiz, win = w_ih.reshape(3, H, H)
        whr, whz, whn = w_hh.reshape(3, H, H)
        bir, biz, bin_ = b_ih.reshape(3, H)
        bhr, bhz, bhn = b_hh.reshape(3, H)

        def step(hprev, x_t):
            r = jax.nn.sigmoid(x_t @ wir.T + bir + hprev @ whr.T + bhr)
            z = jax.nn.sigmoid(x_t @ wiz.T + biz + hprev @ whz.T + bhz)
            n = jnp.tanh(x_t @ win.T + bin_ + r * (hprev @ whn.T + bhn))
            hnew = (1.0 - z) * n + z * hprev
            return hnew, hnew

        h0 = jnp.zeros((h_seq.shape[0], H), jnp.float32)
        _, hs = lax.scan(step, h0, jnp.swapaxes(h_seq, 0, 1))
        return jnp.swapaxes(hs, 0, 1)

    out_f = gru_dir(h, p['w_ih_f'], p['w_hh_f'], p['b_ih_f'], p['b_hh_f'])
    out_b = gru_dir(h[:, ::-1], p['w_ih_b'], p['w_hh_b'],
                    p['b_ih_b'], p['b_hh_b'])[:, ::-1]
    out = jnp.concatenate([out_f, out_b], axis=-1)
    return jnp.tanh(out[:, -1:, :] @ p['fc_w'].T + p['fc_b'])


if __name__ == "__main__":
    text_dims, style_dims = 16, 32
    N, Tx = 2, 8
    key = jax.random.PRNGKey(0)
    k_x, k_p = jax.random.split(key)
    x = jax.random.normal(k_x, (N, Tx, text_dims), jnp.float32)
    params = init_params(k_p, text_dims, style_dims)
    packed = pack_params(params, text_dims, style_dims)

    y = tpse_forward(x, packed, style_dims)
    jax.block_until_ready(y)
    assert y.shape == (N, 1, style_dims) and y.dtype == jnp.float32

    ref = _reference_forward(x, params, style_dims)
    err = float(jnp.max(jnp.abs(y - ref)))
    assert err < 2.5e-2, f"kernel vs reference max-abs-err {err:.3e}"
    print("KERNEL_OK")
</pallas_src>

<mosaic_0001>
module attributes {stable_mosaic.version = 11 : i64} {
  func.func @_tpse_kernel(%arg0: i32, %arg1: i32, %arg2: memref<1x128x48xbf16, #tpu.memory_space<vmem>>, %arg3: memref<48x128xbf16, #tpu.memory_space<vmem>>, %arg4: memref<128x384xbf16, #tpu.memory_space<vmem>>, %arg5: memref<128x256xbf16, #tpu.memory_space<vmem>>, %arg6: memref<128x128xbf16, #tpu.memory_space<vmem>>, %arg7: memref<128x384xbf16, #tpu.memory_space<vmem>>, %arg8: memref<256x128xbf16, #tpu.memory_space<vmem>>, %arg9: memref<2x384xf32, #tpu.memory_space<vmem>>, %arg10: memref<4x128xf32, #tpu.memory_space<vmem>>, %arg11: memref<1x16x128xf32, #tpu.memory_space<vmem>>, %arg12: memref<128x384xbf16, #tpu.memory_space<vmem>>, %arg13: memref<16x128xf32, #tpu.memory_space<vmem>>) attributes {dimension_semantics = [#tpu.dimension_semantics<parallel>, #tpu.dimension_semantics<arbitrary>], iteration_bounds = array<i64: 1, 1>, scalar_prefetch = 0 : i64, scratch_operands = 2 : i64, tpu.core_type = #tpu.core_type<tc>, window_params = [{transform_indices = @transform_0, window_bounds = array<i64: 1, 128, 48>}, {pipeline_mode = #tpu.pipeline_mode<synchronous>, transform_indices = @transform_1, window_bounds = array<i64: 48, 128>}, {pipeline_mode = #tpu.pipeline_mode<synchronous>, transform_indices = @transform_2, window_bounds = array<i64: 128, 384>}, {pipeline_mode = #tpu.pipeline_mode<synchronous>, transform_indices = @transform_3, window_bounds = array<i64: 128, 256>}, {pipeline_mode = #tpu.pipeline_mode<synchronous>, transform_indices = @transform_4, window_bounds = array<i64: 128, 128>}, {pipeline_mode = #tpu.pipeline_mode<synchronous>, transform_indices = @transform_5, window_bounds = array<i64: 128, 384>}, {pipeline_mode = #tpu.pipeline_mode<synchronous>, transform_indices = @transform_6, window_bounds = array<i64: 256, 128>}, {pipeline_mode = #tpu.pipeline_mode<synchronous>, transform_indices = @transform_7, window_bounds = array<i64: 2, 384>}, {pipeline_mode = #tpu.pipeline_mode<synchronous>, transform_indices = @transform_8, window_bounds = array<i64: 4, 128>}, {transform_indices = @transform_9, window_bounds = array<i64: 1, 16, 128>}]} {
    %c0_i32 = arith.constant 0 : i32
    %0 = arith.cmpi eq, %arg1, %c0_i32 : i32
    %1 = arith.extui %0 : i1 to i32
    %c0_i32_0 = arith.constant 0 : i32
    %2 = arith.cmpi ne, %1, %c0_i32_0 : i32
    scf.if %2 {
      %cst_110 = arith.constant 0.000000e+00 : f32
      %316 = vector.broadcast %cst_110 : f32 to vector<16x128xf32>
      %c0_111 = arith.constant 0 : index
      %c0_112 = arith.constant 0 : index
      %317 = vector.load %arg13[%c0_111, %c0_112] : memref<16x128xf32, #tpu.memory_space<vmem>>, vector<16x128xf32>
      tpu.vector_store %arg13[%c0_111, %c0_112], %316 {strides = array<i32>} : memref<16x128xf32, #tpu.memory_space<vmem>>, vector<16x128xf32>,
    } else {
    }
    %c0 = arith.constant 0 : index
    %c0_1 = arith.constant 0 : index
    %c0_2 = arith.constant 0 : index
    %3 = vector.load %arg2[%c0, %c0_1, %c0_2] : memref<1x128x48xbf16, #tpu.memory_space<vmem>>, vector<1x128x48xbf16>
    %4 = vector.shape_cast %3 : vector<1x128x48xbf16> to vector<128x48xbf16>
    %c0_3 = arith.constant 0 : index
    %c0_4 = arith.constant 0 : index
    %5 = vector.load %arg3[%c0_3, %c0_4] : memref<48x128xbf16, #tpu.memory_space<vmem>>, vector<48x128xbf16>
    %cst = arith.constant dense<0.000000e+00> : vector<128x128xf32>
    %6 = tpu.matmul %4, %5, %cst {dimension_numbers = #tpu.dot_dimension_numbers<[1], [0], [0], [1], [0, 0, 1, 1], [], []>} : vector<128x48xbf16>, vector<48x128xbf16>, vector<128x128xf32> -> vector<128x128xf32>
    %c0_5 = arith.constant 0 : index
    %c0_6 = arith.constant 0 : index
    %7 = vector.load %arg10[%c0_5, %c0_6] : memref<4x128xf32, #tpu.memory_space<vmem>>, vector<1x128xf32>
    %8 = vector.broadcast %7 : vector<1x128xf32> to vector<128x128xf32>
    %9 = arith.addf %6, %8 : vector<128x128xf32>
    %cst_7 = arith.constant 0.000000e+00 : f32
    %10 = vector.broadcast %cst_7 : f32 to vector<128x128xf32>
    %11 = arith.maximumf %9, %10 : vector<128x128xf32>
    %12 = arith.truncf %11 : vector<128x128xf32> to vector<128x128xbf16>
    %c0_8 = arith.constant 0 : index
    %c0_9 = arith.constant 0 : index
    %13 = vector.load %arg4[%c0_8, %c0_9] : memref<128x384xbf16, #tpu.memory_space<vmem>>, vector<128x384xbf16>
    %cst_10 = arith.constant dense<0.000000e+00> : vector<128x384xf32>
    %14 = tpu.matmul %12, %13, %cst_10 {dimension_numbers = #tpu.dot_dimension_numbers<[1], [0], [0], [1], [0, 0, 1, 1], [], []>} : vector<128x128xbf16>, vector<128x384xbf16>, vector<128x384xf32> -> vector<128x384xf32>
    %c0_11 = arith.constant 0 : index
    %c0_12 = arith.constant 0 : index
    %15 = vector.load %arg9[%c0_11, %c0_12] : memref<2x384xf32, #tpu.memory_space<vmem>>, vector<1x384xf32>
    %16 = vector.broadcast %15 : vector<1x384xf32> to vector<128x384xf32>
    %17 = arith.addf %14, %16 : vector<128x384xf32>
    %18 = arith.truncf %17 : vector<128x384xf32> to vector<128x384xbf16>
    %c0_13 = arith.constant 0 : index
    %c0_14 = arith.constant 0 : index
    %19 = vector.load %arg12[%c0_13, %c0_14] : memref<128x384xbf16, #tpu.memory_space<vmem>>, vector<128x384xbf16>
    tpu.vector_store %arg12[%c0_13, %c0_14], %18 {strides = array<i32>} : memref<128x384xbf16, #tpu.memory_space<vmem>>, vector<128x384xbf16>,
    %c1 = arith.constant 1 : index
    %c0_15 = arith.constant 0 : index
    %20 = vector.load %arg10[%c1, %c0_15] : memref<4x128xf32, #tpu.memory_space<vmem>>, vector<1x128xf32>
    %21 = vector.shape_cast %20 : vector<1x128xf32> to vector<1x128xf32>
    %22 = vector.broadcast %21 : vector<1x128xf32> to vector<16x128xf32>
    %c0_16 = arith.constant 0 : index
    %c0_17 = arith.constant 0 : index
    %23 = vector.load %arg13[%c0_16, %c0_17] : memref<16x128xf32, #tpu.memory_space<vmem>>, vector<16x128xf32>
    %c0_i32_18 = arith.constant 0 : i32
    %c16_i32 = arith.constant 16 : i32
    %24 = arith.muli %c0_i32_18, %c16_i32 : i32
    %25 = tpu.assume_multiple %24, 16 : i32
    %26 = arith.index_cast %25 : i32 to index
    %c0_19 = arith.constant 0 : index
    %27 = vector.load %arg12[%26, %c0_19] : memref<128x384xbf16, #tpu.memory_space<vmem>>, vector<16x384xbf16>
    %28 = arith.extf %27 : vector<16x384xbf16> to vector<16x384xf32>
    %29 = arith.truncf %23 : vector<16x128xf32> to vector<16x128xbf16>
    %c0_20 = arith.constant 0 : index
    %c0_21 = arith.constant 0 : index
    %30 = vector.load %arg5[%c0_20, %c0_21] : memref<128x256xbf16, #tpu.memory_space<vmem>>, vector<128x256xbf16>
    %cst_22 = arith.constant dense<0.000000e+00> : vector<16x256xf32>
    %31 = tpu.matmul %29, %30, %cst_22 {dimension_numbers = #tpu.dot_dimension_numbers<[1], [0], [0], [1], [0, 0, 1, 1], [], []>} : vector<16x128xbf16>, vector<128x256xbf16>, vector<16x256xf32> -> vector<16x256xf32>
    %c0_23 = arith.constant 0 : index
    %c0_24 = arith.constant 0 : index
    %32 = vector.load %arg6[%c0_23, %c0_24] : memref<128x128xbf16, #tpu.memory_space<vmem>>, vector<128x128xbf16>
    %cst_25 = arith.constant dense<0.000000e+00> : vector<16x128xf32>
    %33 = tpu.matmul %29, %32, %cst_25 {dimension_numbers = #tpu.dot_dimension_numbers<[1], [0], [0], [1], [0, 0, 1, 1], [], []>} : vector<16x128xbf16>, vector<128x128xbf16>, vector<16x128xf32> -> vector<16x128xf32>
    %34 = vector.extract_strided_slice %28 {offsets = [0, 0], sizes = [16, 128], strides = [1, 1]} : vector<16x384xf32> to vector<16x128xf32>
    %35 = vector.extract_strided_slice %31 {offsets = [0, 0], sizes = [16, 128], strides = [1, 1]} : vector<16x256xf32> to vector<16x128xf32>
    %36 = arith.addf %34, %35 : vector<16x128xf32>
    %37 = arith.negf %36 : vector<16x128xf32>
    %38 = math.exp %37 : vector<16x128xf32>
    %cst_26 = arith.constant 1.000000e+00 : f32
    %39 = vector.broadcast %cst_26 : f32 to vector<16x128xf32>
    %40 = arith.addf %39, %38 : vector<16x128xf32>
    %41 = arith.divf %39, %40 : vector<16x128xf32>
    %42 = vector.extract_strided_slice %28 {offsets = [0, 128], sizes = [16, 128], strides = [1, 1]} : vector<16x384xf32> to vector<16x128xf32>
    %43 = vector.extract_strided_slice %31 {offsets = [0, 128], sizes = [16, 128], strides = [1, 1]} : vector<16x256xf32> to vector<16x128xf32>
    %44 = arith.addf %42, %43 : vector<16x128xf32>
    %45 = arith.negf %44 : vector<16x128xf32>
    %46 = math.exp %45 : vector<16x128xf32>
    %cst_27 = arith.constant 1.000000e+00 : f32
    %47 = vector.broadcast %cst_27 : f32 to vector<16x128xf32>
    %48 = arith.addf %47, %46 : vector<16x128xf32>
    %49 = arith.divf %47, %48 : vector<16x128xf32>
    %50 = vector.extract_strided_slice %28 {offsets = [0, 256], sizes = [16, 128], strides = [1, 1]} : vector<16x384xf32> to vector<16x128xf32>
    %51 = arith.addf %33, %22 : vector<16x128xf32>
    %52 = arith.mulf %41, %51 : vector<16x128xf32>
    %53 = arith.addf %50, %52 : vector<16x128xf32>
    %54 = math.tanh %53 : vector<16x128xf32>
    %cst_28 = arith.constant 1.000000e+00 : f32
    %55 = vector.broadcast %cst_28 : f32 to vector<16x128xf32>
    %56 = arith.subf %55, %49 : vector<16x128xf32>
    %57 = arith.mulf %56, %54 : vector<16x128xf32>
    %58 = arith.mulf %49, %23 : vector<16x128xf32>
    %59 = arith.addf %57, %58 : vector<16x128xf32>
    %c1_i32 = arith.constant 1 : i32
    %c16_i32_29 = arith.constant 16 : i32
    %60 = arith.muli %c1_i32, %c16_i32_29 : i32
    %61 = tpu.assume_multiple %60, 16 : i32
    %62 = arith.index_cast %61 : i32 to index
    %c0_30 = arith.constant 0 : index
    %63 = vector.load %arg12[%62, %c0_30] : memref<128x384xbf16, #tpu.memory_space<vmem>>, vector<16x384xbf16>
    %64 = arith.extf %63 : vector<16x384xbf16> to vector<16x384xf32>
    %65 = arith.truncf %59 : vector<16x128xf32> to vector<16x128xbf16>
    %c0_31 = arith.constant 0 : index
    %c0_32 = arith.constant 0 : index
    %66 = vector.load %arg5[%c0_31, %c0_32] : memref<128x256xbf16, #tpu.memory_space<vmem>>, vector<128x256xbf16>
    %cst_33 = arith.constant dense<0.000000e+00> : vector<16x256xf32>
    %67 = tpu.matmul %65, %66, %cst_33 {dimension_numbers = #tpu.dot_dimension_numbers<[1], [0], [0], [1], [0, 0, 1, 1], [], []>} : vector<16x128xbf16>, vector<128x256xbf16>, vector<16x256xf32> -> vector<16x256xf32>
    %c0_34 = arith.constant 0 : index
    %c0_35 = arith.constant 0 : index
    %68 = vector.load %arg6[%c0_34, %c0_35] : memref<128x128xbf16, #tpu.memory_space<vmem>>, vector<128x128xbf16>
    %cst_36 = arith.constant dense<0.000000e+00> : vector<16x128xf32>
    %69 = tpu.matmul %65, %68, %cst_36 {dimension_numbers = #tpu.dot_dimension_numbers<[1], [0], [0], [1], [0, 0, 1, 1], [], []>} : vector<16x128xbf16>, vector<128x128xbf16>, vector<16x128xf32> -> vector<16x128xf32>
    %70 = vector.extract_strided_slice %64 {offsets = [0, 0], sizes = [16, 128], strides = [1, 1]} : vector<16x384xf32> to vector<16x128xf32>
    %71 = vector.extract_strided_slice %67 {offsets = [0, 0], sizes = [16, 128], strides = [1, 1]} : vector<16x256xf32> to vector<16x128xf32>
    %72 = arith.addf %70, %71 : vector<16x128xf32>
    %73 = arith.negf %72 : vector<16x128xf32>
    %74 = math.exp %73 : vector<16x128xf32>
    %cst_37 = arith.constant 1.000000e+00 : f32
    %75 = vector.broadcast %cst_37 : f32 to vector<16x128xf32>
    %76 = arith.addf %75, %74 : vector<16x128xf32>
    %77 = arith.divf %75, %76 : vector<16x128xf32>
    %78 = vector.extract_strided_slice %64 {offsets = [0, 128], sizes = [16, 128], strides = [1, 1]} : vector<16x384xf32> to vector<16x128xf32>
    %79 = vector.extract_strided_slice %67 {offsets = [0, 128], sizes = [16, 128], strides = [1, 1]} : vector<16x256xf32> to vector<16x128xf32>
    %80 = arith.addf %78, %79 : vector<16x128xf32>
    %81 = arith.negf %80 : vector<16x128xf32>
    %82 = math.exp %81 : vector<16x128xf32>
    %cst_38 = arith.constant 1.000000e+00 : f32
    %83 = vector.broadcast %cst_38 : f32 to vector<16x128xf32>
    %84 = arith.addf %83, %82 : vector<16x128xf32>
    %85 = arith.divf %83, %84 : vector<16x128xf32>
    %86 = vector.extract_strided_slice %64 {offsets = [0, 256], sizes = [16, 128], strides = [1, 1]} : vector<16x384xf32> to vector<16x128xf32>
    %87 = arith.addf %69, %22 : vector<16x128xf32>
    %88 = arith.mulf %77, %87 : vector<16x128xf32>
    %89 = arith.addf %86, %88 : vector<16x128xf32>
    %90 = math.tanh %89 : vector<16x128xf32>
    %cst_39 = arith.constant 1.000000e+00 : f32
    %91 = vector.broadcast %cst_39 : f32 to vector<16x128xf32>
    %92 = arith.subf %91, %85 : vector<16x128xf32>
    %93 = arith.mulf %92, %90 : vector<16x128xf32>
    %94 = arith.mulf %85, %59 : vector<16x128xf32>
    %95 = arith.addf %93, %94 : vector<16x128xf32>
    %c2_i32 = arith.constant 2 : i32
    %c16_i32_40 = arith.constant 16 : i32
    %96 = arith.muli %c2_i32, %c16_i32_40 : i32
    %97 = tpu.assume_multiple %96, 16 : i32
    %98 = arith.index_cast %97 : i32 to index
    %c0_41 = arith.constant 0 : index
    %99 = vector.load %arg12[%98, %c0_41] : memref<128x384xbf16, #tpu.memory_space<vmem>>, vector<16x384xbf16>
    %100 = arith.extf %99 : vector<16x384xbf16> to vector<16x384xf32>
    %101 = arith.truncf %95 : vector<16x128xf32> to vector<16x128xbf16>
    %c0_42 = arith.constant 0 : index
    %c0_43 = arith.constant 0 : index
    %102 = vector.load %arg5[%c0_42, %c0_43] : memref<128x256xbf16, #tpu.memory_space<vmem>>, vector<128x256xbf16>
    %cst_44 = arith.constant dense<0.000000e+00> : vector<16x256xf32>
    %103 = tpu.matmul %101, %102, %cst_44 {dimension_numbers = #tpu.dot_dimension_numbers<[1], [0], [0], [1], [0, 0, 1, 1], [], []>} : vector<16x128xbf16>, vector<128x256xbf16>, vector<16x256xf32> -> vector<16x256xf32>
    %c0_45 = arith.constant 0 : index
    %c0_46 = arith.constant 0 : index
    %104 = vector.load %arg6[%c0_45, %c0_46] : memref<128x128xbf16, #tpu.memory_space<vmem>>, vector<128x128xbf16>
    %cst_47 = arith.constant dense<0.000000e+00> : vector<16x128xf32>
    %105 = tpu.matmul %101, %104, %cst_47 {dimension_numbers = #tpu.dot_dimension_numbers<[1], [0], [0], [1], [0, 0, 1, 1], [], []>} : vector<16x128xbf16>, vector<128x128xbf16>, vector<16x128xf32> -> vector<16x128xf32>
    %106 = vector.extract_strided_slice %100 {offsets = [0, 0], sizes = [16, 128], strides = [1, 1]} : vector<16x384xf32> to vector<16x128xf32>
    %107 = vector.extract_strided_slice %103 {offsets = [0, 0], sizes = [16, 128], strides = [1, 1]} : vector<16x256xf32> to vector<16x128xf32>
    %108 = arith.addf %106, %107 : vector<16x128xf32>
    %109 = arith.negf %108 : vector<16x128xf32>
    %110 = math.exp %109 : vector<16x128xf32>
    %cst_48 = arith.constant 1.000000e+00 : f32
    %111 = vector.broadcast %cst_48 : f32 to vector<16x128xf32>
    %112 = arith.addf %111, %110 : vector<16x128xf32>
    %113 = arith.divf %111, %112 : vector<16x128xf32>
    %114 = vector.extract_strided_slice %100 {offsets = [0, 128], sizes = [16, 128], strides = [1, 1]} : vector<16x384xf32> to vector<16x128xf32>
    %115 = vector.extract_strided_slice %103 {offsets = [0, 128], sizes = [16, 128], strides = [1, 1]} : vector<16x256xf32> to vector<16x128xf32>
    %116 = arith.addf %114, %115 : vector<16x128xf32>
    %117 = arith.negf %116 : vector<16x128xf32>
    %118 = math.exp %117 : vector<16x128xf32>
    %cst_49 = arith.constant 1.000000e+00 : f32
    %119 = vector.broadcast %cst_49 : f32 to vector<16x128xf32>
    %120 = arith.addf %119, %118 : vector<16x128xf32>
    %121 = arith.divf %119, %120 : vector<16x128xf32>
    %122 = vector.extract_strided_slice %100 {offsets = [0, 256], sizes = [16, 128], strides = [1, 1]} : vector<16x384xf32> to vector<16x128xf32>
    %123 = arith.addf %105, %22 : vector<16x128xf32>
    %124 = arith.mulf %113, %123 : vector<16x128xf32>
    %125 = arith.addf %122, %124 : vector<16x128xf32>
    %126 = math.tanh %125 : vector<16x128xf32>
    %cst_50 = arith.constant 1.000000e+00 : f32
    %127 = vector.broadcast %cst_50 : f32 to vector<16x128xf32>
    %128 = arith.subf %127, %121 : vector<16x128xf32>
    %129 = arith.mulf %128, %126 : vector<16x128xf32>
    %130 = arith.mulf %121, %95 : vector<16x128xf32>
    %131 = arith.addf %129, %130 : vector<16x128xf32>
    %c3_i32 = arith.constant 3 : i32
    %c16_i32_51 = arith.constant 16 : i32
    %132 = arith.muli %c3_i32, %c16_i32_51 : i32
    %133 = tpu.assume_multiple %132, 16 : i32
    %134 = arith.index_cast %133 : i32 to index
    %c0_52 = arith.constant 0 : index
    %135 = vector.load %arg12[%134, %c0_52] : memref<128x384xbf16, #tpu.memory_space<vmem>>, vector<16x384xbf16>
    %136 = arith.extf %135 : vector<16x384xbf16> to vector<16x384xf32>
    %137 = arith.truncf %131 : vector<16x128xf32> to vector<16x128xbf16>
    %c0_53 = arith.constant 0 : index
    %c0_54 = arith.constant 0 : index
    %138 = vector.load %arg5[%c0_53, %c0_54] : memref<128x256xbf16, #tpu.memory_space<vmem>>, vector<128x256xbf16>
    %cst_55 = arith.constant dense<0.000000e+00> : vector<16x256xf32>
    %139 = tpu.matmul %137, %138, %cst_55 {dimension_numbers = #tpu.dot_dimension_numbers<[1], [0], [0], [1], [0, 0, 1, 1], [], []>} : vector<16x128xbf16>, vector<128x256xbf16>, vector<16x256xf32> -> vector<16x256xf32>
    %c0_56 = arith.constant 0 : index
    %c0_57 = arith.constant 0 : index
    %140 = vector.load %arg6[%c0_56, %c0_57] : memref<128x128xbf16, #tpu.memory_space<vmem>>, vector<128x128xbf16>
    %cst_58 = arith.constant dense<0.000000e+00> : vector<16x128xf32>
    %141 = tpu.matmul %137, %140, %cst_58 {dimension_numbers = #tpu.dot_dimension_numbers<[1], [0], [0], [1], [0, 0, 1, 1], [], []>} : vector<16x128xbf16>, vector<128x128xbf16>, vector<16x128xf32> -> vector<16x128xf32>
    %142 = vector.extract_strided_slice %136 {offsets = [0, 0], sizes = [16, 128], strides = [1, 1]} : vector<16x384xf32> to vector<16x128xf32>
    %143 = vector.extract_strided_slice %139 {offsets = [0, 0], sizes = [16, 128], strides = [1, 1]} : vector<16x256xf32> to vector<16x128xf32>
    %144 = arith.addf %142, %143 : vector<16x128xf32>
    %145 = arith.negf %144 : vector<16x128xf32>
    %146 = math.exp %145 : vector<16x128xf32>
    %cst_59 = arith.constant 1.000000e+00 : f32
    %147 = vector.broadcast %cst_59 : f32 to vector<16x128xf32>
    %148 = arith.addf %147, %146 : vector<16x128xf32>
    %149 = arith.divf %147, %148 : vector<16x128xf32>
    %150 = vector.extract_strided_slice %136 {offsets = [0, 128], sizes = [16, 128], strides = [1, 1]} : vector<16x384xf32> to vector<16x128xf32>
    %151 = vector.extract_strided_slice %139 {offsets = [0, 128], sizes = [16, 128], strides = [1, 1]} : vector<16x256xf32> to vector<16x128xf32>
    %152 = arith.addf %150, %151 : vector<16x128xf32>
    %153 = arith.negf %152 : vector<16x128xf32>
    %154 = math.exp %153 : vector<16x128xf32>
    %cst_60 = arith.constant 1.000000e+00 : f32
    %155 = vector.broadcast %cst_60 : f32 to vector<16x128xf32>
    %156 = arith.addf %155, %154 : vector<16x128xf32>
    %157 = arith.divf %155, %156 : vector<16x128xf32>
    %158 = vector.extract_strided_slice %136 {offsets = [0, 256], sizes = [16, 128], strides = [1, 1]} : vector<16x384xf32> to vector<16x128xf32>
    %159 = arith.addf %141, %22 : vector<16x128xf32>
    %160 = arith.mulf %149, %159 : vector<16x128xf32>
    %161 = arith.addf %158, %160 : vector<16x128xf32>
    %162 = math.tanh %161 : vector<16x128xf32>
    %cst_61 = arith.constant 1.000000e+00 : f32
    %163 = vector.broadcast %cst_61 : f32 to vector<16x128xf32>
    %164 = arith.subf %163, %157 : vector<16x128xf32>
    %165 = arith.mulf %164, %162 : vector<16x128xf32>
    %166 = arith.mulf %157, %131 : vector<16x128xf32>
    %167 = arith.addf %165, %166 : vector<16x128xf32>
    %c4_i32 = arith.constant 4 : i32
    %c16_i32_62 = arith.constant 16 : i32
    %168 = arith.muli %c4_i32, %c16_i32_62 : i32
    %169 = tpu.assume_multiple %168, 16 : i32
    %170 = arith.index_cast %169 : i32 to index
    %c0_63 = arith.constant 0 : index
    %171 = vector.load %arg12[%170, %c0_63] : memref<128x384xbf16, #tpu.memory_space<vmem>>, vector<16x384xbf16>
    %172 = arith.extf %171 : vector<16x384xbf16> to vector<16x384xf32>
    %173 = arith.truncf %167 : vector<16x128xf32> to vector<16x128xbf16>
    %c0_64 = arith.constant 0 : index
    %c0_65 = arith.constant 0 : index
    %174 = vector.load %arg5[%c0_64, %c0_65] : memref<128x256xbf16, #tpu.memory_space<vmem>>, vector<128x256xbf16>
    %cst_66 = arith.constant dense<0.000000e+00> : vector<16x256xf32>
    %175 = tpu.matmul %173, %174, %cst_66 {dimension_numbers = #tpu.dot_dimension_numbers<[1], [0], [0], [1], [0, 0, 1, 1], [], []>} : vector<16x128xbf16>, vector<128x256xbf16>, vector<16x256xf32> -> vector<16x256xf32>
    %c0_67 = arith.constant 0 : index
    %c0_68 = arith.constant 0 : index
    %176 = vector.load %arg6[%c0_67, %c0_68] : memref<128x128xbf16, #tpu.memory_space<vmem>>, vector<128x128xbf16>
    %cst_69 = arith.constant dense<0.000000e+00> : vector<16x128xf32>
    %177 = tpu.matmul %173, %176, %cst_69 {dimension_numbers = #tpu.dot_dimension_numbers<[1], [0], [0], [1], [0, 0, 1, 1], [], []>} : vector<16x128xbf16>, vector<128x128xbf16>, vector<16x128xf32> -> vector<16x128xf32>
    %178 = vector.extract_strided_slice %172 {offsets = [0, 0], sizes = [16, 128], strides = [1, 1]} : vector<16x384xf32> to vector<16x128xf32>
    %179 = vector.extract_strided_slice %175 {offsets = [0, 0], sizes = [16, 128], strides = [1, 1]} : vector<16x256xf32> to vector<16x128xf32>
    %180 = arith.addf %178, %179 : vector<16x128xf32>
    %181 = arith.negf %180 : vector<16x128xf32>
    %182 = math.exp %181 : vector<16x128xf32>
    %cst_70 = arith.constant 1.000000e+00 : f32
    %183 = vector.broadcast %cst_70 : f32 to vector<16x128xf32>
    %184 = arith.addf %183, %182 : vector<16x128xf32>
    %185 = arith.divf %183, %184 : vector<16x128xf32>
    %186 = vector.extract_strided_slice %172 {offsets = [0, 128], sizes = [16, 128], strides = [1, 1]} : vector<16x384xf32> to vector<16x128xf32>
    %187 = vector.extract_strided_slice %175 {offsets = [0, 128], sizes = [16, 128], strides = [1, 1]} : vector<16x256xf32> to vector<16x128xf32>
    %188 = arith.addf %186, %187 : vector<16x128xf32>
    %189 = arith.negf %188 : vector<16x128xf32>
    %190 = math.exp %189 : vector<16x128xf32>
    %cst_71 = arith.constant 1.000000e+00 : f32
    %191 = vector.broadcast %cst_71 : f32 to vector<16x128xf32>
    %192 = arith.addf %191, %190 : vector<16x128xf32>
    %193 = arith.divf %191, %192 : vector<16x128xf32>
    %194 = vector.extract_strided_slice %172 {offsets = [0, 256], sizes = [16, 128], strides = [1, 1]} : vector<16x384xf32> to vector<16x128xf32>
    %195 = arith.addf %177, %22 : vector<16x128xf32>
    %196 = arith.mulf %185, %195 : vector<16x128xf32>
    %197 = arith.addf %194, %196 : vector<16x128xf32>
    %198 = math.tanh %197 : vector<16x128xf32>
    %cst_72 = arith.constant 1.000000e+00 : f32
    %199 = vector.broadcast %cst_72 : f32 to vector<16x128xf32>
    %200 = arith.subf %199, %193 : vector<16x128xf32>
    %201 = arith.mulf %200, %198 : vector<16x128xf32>
    %202 = arith.mulf %193, %167 : vector<16x128xf32>
    %203 = arith.addf %201, %202 : vector<16x128xf32>
    %c5_i32 = arith.constant 5 : i32
    %c16_i32_73 = arith.constant 16 : i32
    %204 = arith.muli %c5_i32, %c16_i32_73 : i32
    %205 = tpu.assume_multiple %204, 16 : i32
    %206 = arith.index_cast %205 : i32 to index
    %c0_74 = arith.constant 0 : index
    %207 = vector.load %arg12[%206, %c0_74] : memref<128x384xbf16, #tpu.memory_space<vmem>>, vector<16x384xbf16>
    %208 = arith.extf %207 : vector<16x384xbf16> to vector<16x384xf32>
    %209 = arith.truncf %203 : vector<16x128xf32> to vector<16x128xbf16>
    %c0_75 = arith.constant 0 : index
    %c0_76 = arith.constant 0 : index
    %210 = vector.load %arg5[%c0_75, %c0_76] : memref<128x256xbf16, #tpu.memory_space<vmem>>, vector<128x256xbf16>
    %cst_77 = arith.constant dense<0.000000e+00> : vector<16x256xf32>
    %211 = tpu.matmul %209, %210, %cst_77 {dimension_numbers = #tpu.dot_dimension_numbers<[1], [0], [0], [1], [0, 0, 1, 1], [], []>} : vector<16x128xbf16>, vector<128x256xbf16>, vector<16x256xf32> -> vector<16x256xf32>
    %c0_78 = arith.constant 0 : index
    %c0_79 = arith.constant 0 : index
    %212 = vector.load %arg6[%c0_78, %c0_79] : memref<128x128xbf16, #tpu.memory_space<vmem>>, vector<128x128xbf16>
    %cst_80 = arith.constant dense<0.000000e+00> : vector<16x128xf32>
    %213 = tpu.matmul %209, %212, %cst_80 {dimension_numbers = #tpu.dot_dimension_numbers<[1], [0], [0], [1], [0, 0, 1, 1], [], []>} : vector<16x128xbf16>, vector<128x128xbf16>, vector<16x128xf32> -> vector<16x128xf32>
    %214 = vector.extract_strided_slice %208 {offsets = [0, 0], sizes = [16, 128], strides = [1, 1]} : vector<16x384xf32> to vector<16x128xf32>
    %215 = vector.extract_strided_slice %211 {offsets = [0, 0], sizes = [16, 128], strides = [1, 1]} : vector<16x256xf32> to vector<16x128xf32>
    %216 = arith.addf %214, %215 : vector<16x128xf32>
    %217 = arith.negf %216 : vector<16x128xf32>
    %218 = math.exp %217 : vector<16x128xf32>
    %cst_81 = arith.constant 1.000000e+00 : f32
    %219 = vector.broadcast %cst_81 : f32 to vector<16x128xf32>
    %220 = arith.addf %219, %218 : vector<16x128xf32>
    %221 = arith.divf %219, %220 : vector<16x128xf32>
    %222 = vector.extract_strided_slice %208 {offsets = [0, 128], sizes = [16, 128], strides = [1, 1]} : vector<16x384xf32> to vector<16x128xf32>
    %223 = vector.extract_strided_slice %211 {offsets = [0, 128], sizes = [16, 128], strides = [1, 1]} : vector<16x256xf32> to vector<16x128xf32>
    %224 = arith.addf %222, %223 : vector<16x128xf32>
    %225 = arith.negf %224 : vector<16x128xf32>
    %226 = math.exp %225 : vector<16x128xf32>
    %cst_82 = arith.constant 1.000000e+00 : f32
    %227 = vector.broadcast %cst_82 : f32 to vector<16x128xf32>
    %228 = arith.addf %227, %226 : vector<16x128xf32>
    %229 = arith.divf %227, %228 : vector<16x128xf32>
    %230 = vector.extract_strided_slice %208 {offsets = [0, 256], sizes = [16, 128], strides = [1, 1]} : vector<16x384xf32> to vector<16x128xf32>
    %231 = arith.addf %213, %22 : vector<16x128xf32>
    %232 = arith.mulf %221, %231 : vector<16x128xf32>
    %233 = arith.addf %230, %232 : vector<16x128xf32>
    %234 = math.tanh %233 : vector<16x128xf32>
    %cst_83 = arith.constant 1.000000e+00 : f32
    %235 = vector.broadcast %cst_83 : f32 to vector<16x128xf32>
    %236 = arith.subf %235, %229 : vector<16x128xf32>
    %237 = arith.mulf %236, %234 : vector<16x128xf32>
    %238 = arith.mulf %229, %203 : vector<16x128xf32>
    %239 = arith.addf %237, %238 : vector<16x128xf32>
    %c6_i32 = arith.constant 6 : i32
    %c16_i32_84 = arith.constant 16 : i32
    %240 = arith.muli %c6_i32, %c16_i32_84 : i32
    %241 = tpu.assume_multiple %240, 16 : i32
    %242 = arith.index_cast %241 : i32 to index
    %c0_85 = arith.constant 0 : index
    %243 = vector.load %arg12[%242, %c0_85] : memref<128x384xbf16, #tpu.memory_space<vmem>>, vector<16x384xbf16>
    %244 = arith.extf %243 : vector<16x384xbf16> to vector<16x384xf32>
    %245 = arith.truncf %239 : vector<16x128xf32> to vector<16x128xbf16>
    %c0_86 = arith.constant 0 : index
    %c0_87 = arith.constant 0 : index
    %246 = vector.load %arg5[%c0_86, %c0_87] : memref<128x256xbf16, #tpu.memory_space<vmem>>, vector<128x256xbf16>
    %cst_88 = arith.constant dense<0.000000e+00> : vector<16x256xf32>
    %247 = tpu.matmul %245, %246, %cst_88 {dimension_numbers = #tpu.dot_dimension_numbers<[1], [0], [0], [1], [0, 0, 1, 1], [], []>} : vector<16x128xbf16>, vector<128x256xbf16>, vector<16x256xf32> -> vector<16x256xf32>
    %c0_89 = arith.constant 0 : index
    %c0_90 = arith.constant 0 : index
    %248 = vector.load %arg6[%c0_89, %c0_90] : memref<128x128xbf16, #tpu.memory_space<vmem>>, vector<128x128xbf16>
    %cst_91 = arith.constant dense<0.000000e+00> : vector<16x128xf32>
    %249 = tpu.matmul %245, %248, %cst_91 {dimension_numbers = #tpu.dot_dimension_numbers<[1], [0], [0], [1], [0, 0, 1, 1], [], []>} : vector<16x128xbf16>, vector<128x128xbf16>, vector<16x128xf32> -> vector<16x128xf32>
    %250 = vector.extract_strided_slice %244 {offsets = [0, 0], sizes = [16, 128], strides = [1, 1]} : vector<16x384xf32> to vector<16x128xf32>
    %251 = vector.extract_strided_slice %247 {offsets = [0, 0], sizes = [16, 128], strides = [1, 1]} : vector<16x256xf32> to vector<16x128xf32>
    %252 = arith.addf %250, %251 : vector<16x128xf32>
    %253 = arith.negf %252 : vector<16x128xf32>
    %254 = math.exp %253 : vector<16x128xf32>
    %cst_92 = arith.constant 1.000000e+00 : f32
    %255 = vector.broadcast %cst_92 : f32 to vector<16x128xf32>
    %256 = arith.addf %255, %254 : vector<16x128xf32>
    %257 = arith.divf %255, %256 : vector<16x128xf32>
    %258 = vector.extract_strided_slice %244 {offsets = [0, 128], sizes = [16, 128], strides = [1, 1]} : vector<16x384xf32> to vector<16x128xf32>
    %259 = vector.extract_strided_slice %247 {offsets = [0, 128], sizes = [16, 128], strides = [1, 1]} : vector<16x256xf32> to vector<16x128xf32>
    %260 = arith.addf %258, %259 : vector<16x128xf32>
    %261 = arith.negf %260 : vector<16x128xf32>
    %262 = math.exp %261 : vector<16x128xf32>
    %cst_93 = arith.constant 1.000000e+00 : f32
    %263 = vector.broadcast %cst_93 : f32 to vector<16x128xf32>
    %264 = arith.addf %263, %262 : vector<16x128xf32>
    %265 = arith.divf %263, %264 : vector<16x128xf32>
    %266 = vector.extract_strided_slice %244 {offsets = [0, 256], sizes = [16, 128], strides = [1, 1]} : vector<16x384xf32> to vector<16x128xf32>
    %267 = arith.addf %249, %22 : vector<16x128xf32>
    %268 = arith.mulf %257, %267 : vector<16x128xf32>
    %269 = arith.addf %266, %268 : vector<16x128xf32>
    %270 = math.tanh %269 : vector<16x128xf32>
    %cst_94 = arith.constant 1.000000e+00 : f32
    %271 = vector.broadcast %cst_94 : f32 to vector<16x128xf32>
    %272 = arith.subf %271, %265 : vector<16x128xf32>
    %273 = arith.mulf %272, %270 : vector<16x128xf32>
    %274 = arith.mulf %265, %239 : vector<16x128xf32>
    %275 = arith.addf %273, %274 : vector<16x128xf32>
    %c7_i32 = arith.constant 7 : i32
    %c16_i32_95 = arith.constant 16 : i32
    %276 = arith.muli %c7_i32, %c16_i32_95 : i32
    %277 = tpu.assume_multiple %276, 16 : i32
    %278 = arith.index_cast %277 : i32 to index
    %c0_96 = arith.constant 0 : index
    %279 = vector.load %arg12[%278, %c0_96] : memref<128x384xbf16, #tpu.memory_space<vmem>>, vector<16x384xbf16>
    %280 = arith.extf %279 : vector<16x384xbf16> to vector<16x384xf32>
    %281 = arith.truncf %275 : vector<16x128xf32> to vector<16x128xbf16>
    %c0_97 = arith.constant 0 : index
    %c0_98 = arith.constant 0 : index
    %282 = vector.load %arg5[%c0_97, %c0_98] : memref<128x256xbf16, #tpu.memory_space<vmem>>, vector<128x256xbf16>
    %cst_99 = arith.constant dense<0.000000e+00> : vector<16x256xf32>
    %283 = tpu.matmul %281, %282, %cst_99 {dimension_numbers = #tpu.dot_dimension_numbers<[1], [0], [0], [1], [0, 0, 1, 1], [], []>} : vector<16x128xbf16>, vector<128x256xbf16>, vector<16x256xf32> -> vector<16x256xf32>
    %c0_100 = arith.constant 0 : index
    %c0_101 = arith.constant 0 : index
    %284 = vector.load %arg6[%c0_100, %c0_101] : memref<128x128xbf16, #tpu.memory_space<vmem>>, vector<128x128xbf16>
    %cst_102 = arith.constant dense<0.000000e+00> : vector<16x128xf32>
    %285 = tpu.matmul %281, %284, %cst_102 {dimension_numbers = #tpu.dot_dimension_numbers<[1], [0], [0], [1], [0, 0, 1, 1], [], []>} : vector<16x128xbf16>, vector<128x128xbf16>, vector<16x128xf32> -> vector<16x128xf32>
    %286 = vector.extract_strided_slice %280 {offsets = [0, 0], sizes = [16, 128], strides = [1, 1]} : vector<16x384xf32> to vector<16x128xf32>
    %287 = vector.extract_strided_slice %283 {offsets = [0, 0], sizes = [16, 128], strides = [1, 1]} : vector<16x256xf32> to vector<16x128xf32>
    %288 = arith.addf %286, %287 : vector<16x128xf32>
    %289 = arith.negf %288 : vector<16x128xf32>
    %290 = math.exp %289 : vector<16x128xf32>
    %cst_103 = arith.constant 1.000000e+00 : f32
    %291 = vector.broadcast %cst_103 : f32 to vector<16x128xf32>
    %292 = arith.addf %291, %290 : vector<16x128xf32>
    %293 = arith.divf %291, %292 : vector<16x128xf32>
    %294 = vector.extract_strided_slice %280 {offsets = [0, 128], sizes = [16, 128], strides = [1, 1]} : vector<16x384xf32> to vector<16x128xf32>
    %295 = vector.extract_strided_slice %283 {offsets = [0, 128], sizes = [16, 128], strides = [1, 1]} : vector<16x256xf32> to vector<16x128xf32>
    %296 = arith.addf %294, %295 : vector<16x128xf32>
    %297 = arith.negf %296 : vector<16x128xf32>
    %298 = math.exp %297 : vector<16x128xf32>
    %cst_104 = arith.constant 1.000000e+00 : f32
    %299 = vector.broadcast %cst_104 : f32 to vector<16x128xf32>
    %300 = arith.addf %299, %298 : vector<16x128xf32>
    %301 = arith.divf %299, %300 : vector<16x128xf32>
    %302 = vector.extract_strided_slice %280 {offsets = [0, 256], sizes = [16, 128], strides = [1, 1]} : vector<16x384xf32> to vector<16x128xf32>
    %303 = arith.addf %285, %22 : vector<16x128xf32>
    %304 = arith.mulf %293, %303 : vector<16x128xf32>
    %305 = arith.addf %302, %304 : vector<16x128xf32>
    %306 = math.tanh %305 : vector<16x128xf32>
    %cst_105 = arith.constant 1.000000e+00 : f32
    %307 = vector.broadcast %cst_105 : f32 to vector<16x128xf32>
    %308 = arith.subf %307, %301 : vector<16x128xf32>
    %309 = arith.mulf %308, %306 : vector<16x128xf32>
    %310 = arith.mulf %301, %275 : vector<16x128xf32>
    %311 = arith.addf %309, %310 : vector<16x128xf32>
    %c8_i32 = arith.constant 8 : i32
    %c0_106 = arith.constant 0 : index
    %c0_107 = arith.constant 0 : index
    %312 = vector.load %arg13[%c0_106, %c0_107] : memref<16x128xf32, #tpu.memory_space<vmem>>, vector<16x128xf32>
    tpu.vector_store %arg13[%c0_106, %c0_107], %311 {strides = array<i32>} : memref<16x128xf32, #tpu.memory_space<vmem>>, vector<16x128xf32>,
    %c0_i32_108 = arith.constant 0 : i32
    %313 = arith.cmpi eq, %arg1, %c0_i32_108 : i32
    %314 = arith.extui %313 : i1 to i32
    %c0_i32_109 = arith.constant 0 : i32
    %315 = arith.cmpi ne, %314, %c0_i32_109 : i32
    scf.if %315 {
      %c0_110 = arith.constant 0 : index
      %c0_111 = arith.constant 0 : index
      %316 = vector.load %arg13[%c0_110, %c0_111] : memref<16x128xf32, #tpu.memory_space<vmem>>, vector<16x128xf32>
      %317 = vector.extract_strided_slice %12 {offsets = [112, 0], sizes = [16, 128], strides = [1, 1]} : vector<128x128xbf16> to vector<16x128xbf16>
      %c0_112 = arith.constant 0 : index
      %c0_113 = arith.constant 0 : index
      %318 = vector.load %arg7[%c0_112, %c0_113] : memref<128x384xbf16, #tpu.memory_space<vmem>>, vector<128x384xbf16>
      %cst_114 = arith.constant dense<0.000000e+00> : vector<16x384xf32>
      %319 = tpu.matmul %317, %318, %cst_114 {dimension_numbers = #tpu.dot_dimension_numbers<[1], [0], [0], [1], [0, 0, 1, 1], [], []>} : vector<16x128xbf16>, vector<128x384xbf16>, vector<16x384xf32> -> vector<16x384xf32>
      %c1_115 = arith.constant 1 : index
      %c0_116 = arith.constant 0 : index
      %320 = vector.load %arg9[%c1_115, %c0_116] : memref<2x384xf32, #tpu.memory_space<vmem>>, vector<1x384xf32>
      %321 = vector.broadcast %320 : vector<1x384xf32> to vector<16x384xf32>
      %322 = arith.addf %319, %321 : vector<16x384xf32>
      %323 = vector.extract_strided_slice %322 {offsets = [0, 0], sizes = [16, 128], strides = [1, 1]} : vector<16x384xf32> to vector<16x128xf32>
      %324 = arith.negf %323 : vector<16x128xf32>
      %325 = math.exp %324 : vector<16x128xf32>
      %cst_117 = arith.constant 1.000000e+00 : f32
      %326 = vector.broadcast %cst_117 : f32 to vector<16x128xf32>
      %327 = arith.addf %326, %325 : vector<16x128xf32>
      %328 = arith.divf %326, %327 : vector<16x128xf32>
      %329 = vector.extract_strided_slice %322 {offsets = [0, 128], sizes = [16, 128], strides = [1, 1]} : vector<16x384xf32> to vector<16x128xf32>
      %330 = arith.negf %329 : vector<16x128xf32>
      %331 = math.exp %330 : vector<16x128xf32>
      %cst_118 = arith.constant 1.000000e+00 : f32
      %332 = vector.broadcast %cst_118 : f32 to vector<16x128xf32>
      %333 = arith.addf %332, %331 : vector<16x128xf32>
      %334 = arith.divf %332, %333 : vector<16x128xf32>
      %335 = vector.extract_strided_slice %322 {offsets = [0, 256], sizes = [16, 128], strides = [1, 1]} : vector<16x384xf32> to vector<16x128xf32>
      %c2 = arith.constant 2 : index
      %c0_119 = arith.constant 0 : index
      %336 = vector.load %arg10[%c2, %c0_119] : memref<4x128xf32, #tpu.memory_space<vmem>>, vector<1x128xf32>
      %337 = vector.broadcast %336 : vector<1x128xf32> to vector<16x128xf32>
      %338 = arith.mulf %328, %337 : vector<16x128xf32>
      %339 = arith.addf %335, %338 : vector<16x128xf32>
      %340 = math.tanh %339 : vector<16x128xf32>
      %cst_120 = arith.constant 1.000000e+00 : f32
      %341 = vector.broadcast %cst_120 : f32 to vector<16x128xf32>
      %342 = arith.subf %341, %334 : vector<16x128xf32>
      %343 = arith.mulf %342, %340 : vector<16x128xf32>
      %344 = tpu.concatenate %316, %343 in 1 : vector<16x128xf32>, vector<16x128xf32> -> vector<16x256xf32>
      %345 = arith.truncf %344 : vector<16x256xf32> to vector<16x256xbf16>
      %c0_121 = arith.constant 0 : index
      %c0_122 = arith.constant 0 : index
      %346 = vector.load %arg8[%c0_121, %c0_122] : memref<256x128xbf16, #tpu.memory_space<vmem>>, vector<256x128xbf16>
      %cst_123 = arith.constant dense<0.000000e+00> : vector<16x128xf32>
      %347 = tpu.matmul %345, %346, %cst_123 {dimension_numbers = #tpu.dot_dimension_numbers<[1], [0], [0], [1], [0, 0, 1, 1], [], []>} : vector<16x256xbf16>, vector<256x128xbf16>, vector<16x128xf32> -> vector<16x128xf32>
      %c3 = arith.constant 3 : index
      %c0_124 = arith.constant 0 : index
      %348 = vector.load %arg10[%c3, %c0_124] : memref<4x128xf32, #tpu.memory_space<vmem>>, vector<1x128xf32>
      %349 = vector.broadcast %348 : vector<1x128xf32> to vector<16x128xf32>
      %350 = arith.addf %347, %349 : vector<16x128xf32>
      %351 = math.tanh %350 : vector<16x128xf32>
      %c0_125 = arith.constant 0 : index
      %c0_126 = arith.constant 0 : index
      %c0_127 = arith.constant 0 : index
      %352 = vector.load %arg11[%c0_125, %c0_126, %c0_127] : memref<1x16x128xf32, #tpu.memory_space<vmem>>, vector<1x16x128xf32>
      %353 = vector.shape_cast %352 : vector<1x16x128xf32> to vector<16x128xf32>
      %354 = vector.shape_cast %351 : vector<16x128xf32> to vector<1x16x128xf32>
      tpu.vector_store %arg11[%c0_125, %c0_126, %c0_127], %354 {strides = array<i32>} : memref<1x16x128xf32, #tpu.memory_space<vmem>>, vector<1x16x128xf32>,
    } else {
    }
    return
  }
  func.func @transform_0(%arg0: i32, %arg1: i32) -> (i32, i32, i32) {
    %c0_i32 = arith.constant 0 : i32
    %c0_i32_0 = arith.constant 0 : i32
    return %arg0, %arg1, %c0_i32 : i32, i32, i32
  }
  func.func @transform_1(%arg0: i32, %arg1: i32) -> (i32, i32) {
    %c0_i32 = arith.constant 0 : i32
    %c0_i32_0 = arith.constant 0 : i32
    %c0_i32_1 = arith.constant 0 : i32
    return %c0_i32, %c0_i32_0 : i32, i32
  }
  func.func @transform_2(%arg0: i32, %arg1: i32) -> (i32, i32) {
    %c0_i32 = arith.constant 0 : i32
    %c0_i32_0 = arith.constant 0 : i32
    %c0_i32_1 = arith.constant 0 : i32
    return %c0_i32, %c0_i32_0 : i32, i32
  }
  func.func @transform_3(%arg0: i32, %arg1: i32) -> (i32, i32) {
    %c0_i32 = arith.constant 0 : i32
    %c0_i32_0 = arith.constant 0 : i32
    %c0_i32_1 = arith.constant 0 : i32
    return %c0_i32, %c0_i32_0 : i32, i32
  }
  func.func @transform_4(%arg0: i32, %arg1: i32) -> (i32, i32) {
    %c0_i32 = arith.constant 0 : i32
    %c0_i32_0 = arith.constant 0 : i32
    %c0_i32_1 = arith.constant 0 : i32
    return %c0_i32, %c0_i32_0 : i32, i32
  }
  func.func @transform_5(%arg0: i32, %arg1: i32) -> (i32, i32) {
    %c0_i32 = arith.constant 0 : i32
    %c0_i32_0 = arith.constant 0 : i32
    %c0_i32_1 = arith.constant 0 : i32
    return %c0_i32, %c0_i32_0 : i32, i32
  }
  func.func @transform_6(%arg0: i32, %arg1: i32) -> (i32, i32) {
    %c0_i32 = arith.constant 0 : i32
    %c0_i32_0 = arith.constant 0 : i32
    %c0_i32_1 = arith.constant 0 : i32
    return %c0_i32, %c0_i32_0 : i32, i32
  }
  func.func @transform_7(%arg0: i32, %arg1: i32) -> (i32, i32) {
    %c0_i32 = arith.constant 0 : i32
    %c0_i32_0 = arith.constant 0 : i32
    %c0_i32_1 = arith.constant 0 : i32
    return %c0_i32, %c0_i32_0 : i32, i32
  }
  func.func @transform_8(%arg0: i32, %arg1: i32) -> (i32, i32) {
    %c0_i32 = arith.constant 0 : i32
    %c0_i32_0 = arith.constant 0 : i32
    %c0_i32_1 = arith.constant 0 : i32
    return %c0_i32, %c0_i32_0 : i32, i32
  }
  func.func @transform_9(%arg0: i32, %arg1: i32) -> (i32, i32, i32) {
    %c0_i32 = arith.constant 0 : i32
    %c0_i32_0 = arith.constant 0 : i32
    %c0_i32_1 = arith.constant 0 : i32
    return %arg0, %c0_i32, %c0_i32_0 : i32, i32, i32
  }
}

</mosaic_0001>

<bundles_post_ra>
// kernel: tpse_forward.1
= control target key start
LH: loop header
LB: loop body
LE: loop exit
PB: predicated region body
PF: predicated region fallthrough
CT: control target
= control target key end

     0   :  { %14 = vsyncpa [#allocation5], 0  ;;  %s4514_s0 = inlined_call_operand.vmem [shape: bf16[1,128,48], index: 0, kind: input, shape index: {}]   ;;  %s4515_s1 = inlined_call_operand.hbm [shape: bf16[48,128], index: 1, kind: input, shape index: {}]   ;;  %s4516_s2 = inlined_call_operand.vmem [shape: bf16[128,384], index: 2, kind: input, shape index: {}]   ;;  %s4517_s3 = inlined_call_operand.vmem [shape: bf16[128,256], index: 3, kind: input, shape index: {}]   ;;  %s4518_s4 = inlined_call_operand.hbm [shape: bf16[128,128], index: 4, kind: input, shape index: {}]   ;;  %s4519_s5 = inlined_call_operand.hbm [shape: bf16[128,384], index: 5, kind: input, shape index: {}]   ;;  %s4520_s6 = inlined_call_operand.hbm [shape: bf16[256,128], index: 6, kind: input, shape index: {}]   ;;  %s4521_s7 = inlined_call_operand.vmem [shape: f32[2,384], index: 7, kind: input, shape index: {}]   ;;  %s4522_s8 = inlined_call_operand.vmem [shape: f32[4,128], index: 8, kind: input, shape index: {}]   ;;  %s4523_s9 = inlined_call_operand.vmem [shape: f32[1,16,128], index: 9, kind: output, shape index: {}]  }
   0x1   :  { %15 = vsyncpa [#allocation7], 0 }
   0x2   :  { %16 = vsyncpa [#allocation10], 0  ;;  %s3491_s30 = smov [#allocation6]   ;;  %s3492_s11 = smov [#allocation4]  }
   0x3   :  { %s40_s10 = sshll.u32 %s3491_s30, 4  ;;  %s24_s12 = sshll.u32 %s3492_s11, 4  ;;  %s41_s10 = int_to_ptr.vmem [resolvable:$true] %s40_s10  ;;  %s3553_s12 = int_to_ptr.vmem [resolvable:$true] %s24_s12 }
   0x4   :  { %s3397_s15 = scalar_lea.hbm %s4518_s4, 1024 }
   0x5   :  { %p3398_p0 = scmp.ne.s32.totalorder %s4518_s4, %s3397_s15  ;;  %p3401_p1 = scmp.lt.u32.totalorder %s3397_s15, %s4518_s4 }
   0x7   :  { %p3403_p2 = pnand %p3401_p1, %p3398_p0 }
   0x9   :  { %3406 = shalt.err (!%p3403_p2)
}
   0xa   :  { %s3407_s20 = scalar_lea.vmem %s41_s10, 1024  ;;  %p3412_p4 = scmp.lt.s32.totalorder %s41_s10, %s41_s10 }
   0xb   :  { %p3408_p3 = scmp.ne.s32.totalorder %s41_s10, %s3407_s20  ;;  %p3413_p5 = scmp.lt.s32.totalorder %s3407_s20, %s3407_s20 }
   0xd   :  { %p3414_p6 = por %p3413_p5, %p3412_p4 }
   0xf   :  { %p3415_p7 = pnand %p3414_p6, %p3408_p3 }
  0x11   :  { %3418 = shalt.err (!%p3415_p7)
}
  0x12   :  { %s3493_s21 = smov 64   ;;  %s3494_s22 = smov 4  }
  0x13   :  { %46 = dma.hbm_to_vmem [thread:$0]  %s4518_s4, 1024, %s41_s10, [#allocation7], %s3493_s21, %s3493_s21, %s3494_s22  }
  0x14   :  { %s3419_s27 = scalar_lea.hbm %s4515_s1, 384 }
  0x15   :  { %p3420_p8 = scmp.ne.s32.totalorder %s4515_s1, %s3419_s27  ;;  %p3423_p9 = scmp.lt.u32.totalorder %s3419_s27, %s4515_s1 }
  0x17   :  { %p3425_p10 = pnand %p3423_p9, %p3420_p8 }
  0x19   :  { %3428 = shalt.err (!%p3425_p10)
}
  0x1a   :  { %s3429_s13 = scalar_lea.vmem %s3553_s12, 384  ;;  %p3434_p12 = scmp.lt.s32.totalorder %s3553_s12, %s3553_s12 }
  0x1b   :  { %p3430_p11 = scmp.ne.s32.totalorder %s3553_s12, %s3429_s13  ;;  %p3435_p13 = scmp.lt.s32.totalorder %s3429_s13, %s3429_s13 }
  0x1d   :  { %p3436_p0 = por %p3435_p13, %p3434_p12 }
  0x1f   :  { %p3437_p1 = pnand %p3436_p0, %p3430_p11 }
  0x21   :  { %3440 = shalt.err (!%p3437_p1)
}
  0x22   :  { %30 = dma.hbm_to_vmem [thread:$0]  %s4515_s1, 384, %s3553_s12, [#allocation5], %s3493_s21, %s3493_s21, %s3494_s22  }
  0x23   :  { %s3495_s14 = smov [#allocation8]   ;;  %s3441_s18 = scalar_lea.hbm %s4519_s5, 3072 }
  0x24   :  { %s52_s15 = sshll.u32 %s3495_s14, 4  ;;  %p3442_p2 = scmp.ne.s32.totalorder %s4519_s5, %s3441_s18  ;;  %s53_s15 = int_to_ptr.vmem [resolvable:$true] %s52_s15 }
  0x25   :  { %p3445_p3 = scmp.lt.u32.totalorder %s3441_s18, %s4519_s5 }
  0x27   :  { %p3447_p4 = pnand %p3445_p3, %p3442_p2 }
  0x29   :  { %3450 = shalt.err (!%p3447_p4)
}
  0x2a   :  { %s3451_s25 = scalar_lea.vmem %s53_s15, 3072  ;;  %p3456_p6 = scmp.lt.s32.totalorder %s53_s15, %s53_s15 }
  0x2b   :  { %p3452_p5 = scmp.ne.s32.totalorder %s53_s15, %s3451_s25  ;;  %p3457_p7 = scmp.lt.s32.totalorder %s3451_s25, %s3451_s25 }
  0x2d   :  { %p3458_p8 = por %p3457_p7, %p3456_p6 }
  0x2f   :  { %p3459_p9 = pnand %p3458_p8, %p3452_p5 }
  0x31   :  { %3462 = shalt.err (!%p3459_p9)
}
  0x32   :  { %s3496_s1 = smov 192   ;;  %s3497_s12 = smov 12  }
  0x33   :  { %58 = dma.hbm_to_vmem [thread:$0]  %s4519_s5, 3072, %s53_s15, [#allocation7], %s3496_s1, %s3496_s1, %s3497_s12  }
  0x34   :  { %s3498_s28 = smov [#allocation9]   ;;  %s3463_s13 = scalar_lea.hbm %s4520_s6, 2048 }
  0x35   :  { %s64_s29 = sshll.u32 %s3498_s28, 4  ;;  %p3464_p10 = scmp.ne.s32.totalorder %s4520_s6, %s3463_s13  ;;  %s65_s29 = int_to_ptr.vmem [resolvable:$true] %s64_s29 }
  0x36   :  { %p3467_p11 = scmp.lt.u32.totalorder %s3463_s13, %s4520_s6 }
  0x38   :  { %p3469_p12 = pnand %p3467_p11, %p3464_p10 }
  0x3a   :  { %3472 = shalt.err (!%p3469_p12)
}
  0x3b   :  { %s3473_s17 = scalar_lea.vmem %s65_s29, 2048  ;;  %p3478_p0 = scmp.lt.s32.totalorder %s65_s29, %s65_s29 }
  0x3c   :  { %p3474_p13 = scmp.ne.s32.totalorder %s65_s29, %s3473_s17  ;;  %p3479_p1 = scmp.lt.s32.totalorder %s3473_s17, %s3473_s17 }
  0x3e   :  { %p3480_p2 = por %p3479_p1, %p3478_p0 }
  0x40   :  { %p3481_p3 = pnand %p3480_p2, %p3474_p13 }
  0x42   :  { %3484 = shalt.err (!%p3481_p3)
}
  0x43   :  { %70 = dma.hbm_to_vmem [thread:$0]  %s4520_s6, 2048, %s65_s29, [#allocation10], %s3493_s21, %s3493_s21, %s3494_s22  }
  0x44   :  { %3485 = dma.done.wait [#allocation5], 384  }
  0x45   :  { %3486 = vsyncadd [#allocation5], 4294966912 }
  0x46   :  { %3487 = dma.done.wait [#allocation7], 4096  }
  0x47   :  { %3488 = vsyncadd [#allocation7], 4294963200 }
  0x48   :  { %3489 = dma.done.wait [#allocation10], 2048  }
  0x49   :  { %3490 = vsyncadd [#allocation10], 4294965248  ;;  %v3065_v0 = vld [vmem:[#allocation4] sm:$0xff]   ;;  %v3066_v1 = vld [vmem:[#allocation4 + $0x8] sm:$0xff]   ;;  %vm179_vm0 = vcmask 392192   ;;  %v4527_v35 = vmov 0  }
  0x4a   :  { %2819 = vmatprep.subr.bf16.mxu0 %v3065_v0  ;;  %v3068_v2 = vld [vmem:[%s4514_s0] sm:$0xff]   ;;  %v3067_v3 = vld [vmem:[#allocation4 + $0x10] sm:$0xff]   ;;  %v3069_v4 = vld [vmem:[%s4514_s0 + $0x8] sm:$0xff]   ;;  %534 = vmatprep.mubr.bf16.mxu1 %v4527_v35  ;;  %v4529_v37 = vmov 0.0   ;;  %vm3502_vm1 = vmmov 0  }
  0x4b   :  { %2820 = vmatpush3.bf16.msra.mxu0 %v3065_v0  ;;  %2825 = vmatprep.mubr.msk.bf16.mxu0 %vm179_vm0, %v3068_v2  ;;  %v3070_v5 = vld [vmem:[%s4514_s0 + $0x10] sm:$0xff]   ;;  %v3078_v7 = vld [vmem:[%s4516_s2] ss:$12 sps:$4 sm:$0xff]   ;;  %v3080_v9 = vld [vmem:[%s4516_s2 + $0x1c] ss:$12 sps:$4 sm:$0xff]  }
  0x4c   :  { %2821 = vmatprep.subr.bf16.mxu0 %v3066_v1  ;;  %v3076_v6 = vld [vmem:[%s4516_s2 + $0x4] ss:$12 sps:$4 sm:$0xff]   ;;  %v3079_v8 = vld [vmem:[%s4516_s2 + $0x8] ss:$12 sps:$4 sm:$0xff]   ;;  %v3083_v11 = vld [vmem:[%s4516_s2 + $0x20] ss:$12 sps:$4 sm:$0xff]  }
  0x4d   :  { %502 = vmatprep.subr.bf16.mxu1 %v3076_v6  ;;  %v3082_v10 = vld [vmem:[%s4516_s2 + $0x18] ss:$12 sps:$4 sm:$0xff]   ;;  %v3084_v13 = vld [vmem:[%s4516_s2 + $0x34] ss:$12 sps:$4 sm:$0xff]   ;;  %v3086_v16 = vld [vmem:[%s4516_s2 + $0x30] ss:$12 sps:$4 sm:$0xff]  }
  0x4e   :  { %503 = vmatpush1.bf16.msra.mxu1 %v3078_v7  ;;  %v3071_v12 = vld [vmem:[%s4514_s0 + $0x18] sm:$0xff]   ;;  %v3072_v14 = vld [vmem:[%s4514_s0 + $0x20] sm:$0xff]   ;;  %v3090_v19 = vld [vmem:[%s4516_s2 + $0x48] ss:$12 sps:$4 sm:$0xff]  }
  0x4f   :  { %2822 = vmatpush3.bf16.msra.mxu0 %v3066_v1  ;;  %504 = vmatprep.subr.bf16.mxu1 %v3080_v9  ;;  %v3087_v15 = vld [vmem:[%s4516_s2 + $0x38] ss:$12 sps:$4 sm:$0xff]   ;;  %v3091_v18 = vld [vmem:[%s4516_s2 + $0x50] ss:$12 sps:$4 sm:$0xff]   ;;  %v3073_v21 = vld [vmem:[%s4514_s0 + $0x28] sm:$0xff]  }
  0x50   :  { %2823 = vmatprep.subr.bf16.mxu0 %v3067_v3  ;;  %v3088_v17 = vld [vmem:[%s4516_s2 + $0x4c] ss:$12 sps:$4 sm:$0xff]   ;;  %v3092_v20 = vld [vmem:[%s4516_s2 + $0x64] ss:$12 sps:$4 sm:$0xff]   ;;  %v3095_v23 = vld [vmem:[%s4516_s2 + $0x68] ss:$12 sps:$4 sm:$0xff]  }
  0x51   :  { %v3094_v22 = vld [vmem:[%s4516_s2 + $0x60] ss:$12 sps:$4 sm:$0xff]   ;;  %v3074_v24 = vld [vmem:[%s4514_s0 + $0x30] sm:$0xff]   ;;  %v3096_v25 = vld [vmem:[%s4516_s2 + $0x7c] ss:$12 sps:$4 sm:$0xff]  }
  0x52   :  { %505 = vmatpush1.bf16.msra.mxu1 %v3082_v10  ;;  %v3099_v26 = vld [vmem:[%s4516_s2 + $0x80] ss:$12 sps:$4 sm:$0xff]   ;;  %v3098_v27 = vld [vmem:[%s4516_s2 + $0x78] ss:$12 sps:$4 sm:$0xff]   ;;  %v3102_v30 = vld [vmem:[%s4516_s2 + $0x90] ss:$12 sps:$4 sm:$0xff]  }
  0x53   :  { %2824 = vmatpush3.bf16.msra.mxu0 %v3067_v3  ;;  %506 = vmatprep.subr.bf16.mxu1 %v3084_v13  ;;  %v3075_v28 = vld [vmem:[%s4514_s0 + $0x38] sm:$0xff]   ;;  %v3100_v29 = vld [vmem:[%s4516_s2 + $0x94] ss:$12 sps:$4 sm:$0xff]   ;;  %v3725_v36 = vld [vmem:[%s4517_s3 + $0x4] ss:$8 sps:$4 sm:$0xff]  }
  0x54   :  { %2841 = vmatprep.subr.bf16.mxu0 %v3079_v8  ;;  %v3103_v31 = vld [vmem:[%s4516_s2 + $0x98] ss:$12 sps:$4 sm:$0xff]   ;;  %v3106_v33 = vld [vmem:[%s4516_s2 + $0xa8] ss:$12 sps:$4 sm:$0xff]   ;;  %v3107_v34 = vld [vmem:[%s4516_s2 + $0xb0] ss:$12 sps:$4 sm:$0xff]  }
  0x55   :  { %v3104_v32 = vld [vmem:[%s4516_s2 + $0xac] ss:$12 sps:$4 sm:$0xff]   ;;  %v3732_v38 = vld [vmem:[%s4522_s8] ss:$0 sm:$0xff]  ;;  %v3749_v58 = vld [vmem:[%s4517_s3 + $0x14] ss:$8 sps:$4 sm:$0xff]  }
  0x56   :  { %2826 = vmatmul.mubr.msk.bf16.vlgmr.msra.gmra.mrb[0].mxu0 %vm179_vm0, %v3069_v4  ;;  %507 = vmatpush1.bf16.msra.mxu1 %v3086_v16  ;;  %v3738_v52 = vld [vmem:[#allocation6] sm:$0xff]   ;;  %v3743_v55 = vld [vmem:[%s4517_s3] ss:$8 sps:$4 sm:$0xff]  }
  0x57   :  { %2829 = vmatprep.mubr.msk.bf16.mxu0 %vm179_vm0, %v3070_v5  ;;  %2842 = vmatpush3.bf16.msra.mxu0 %v3079_v8  ;;  %v3754_v0 = vld [vmem:[#allocation6 + $0x8] sm:$0xff]   ;;  %v3761_v3 = vld [vmem:[%s4517_s3 + $0x10] ss:$8 sps:$4 sm:$0xff]  }
  0x58   :  { %2843 = vmatprep.subr.bf16.mxu0 %v3083_v11  ;;  %508 = vmatprep.subr.bf16.mxu1 %v3088_v17  ;;  %v3769_v5 = vld [vmem:[%s4517_s3 + $0x24] ss:$8 sps:$4 sm:$0xff]   ;;  %v3778_v10 = vld [vmem:[%s4517_s3 + $0x20] ss:$8 sps:$4 sm:$0xff]  }
  0x5a   :  { %509 = vmatpush1.bf16.msra.mxu1 %v3090_v19 }
  0x5b   :  { %2844 = vmatpush3.bf16.msra.mxu0 %v3083_v11  ;;  %510 = vmatprep.subr.bf16.mxu1 %v3092_v20  ;;  %v3781_v11 = vld [vmem:[#allocation6 + $0x10] sm:$0xff]  }
  0x5c   :  { %2845 = vmatprep.subr.bf16.mxu0 %v3087_v15 }
  0x5e   :  { %2830 = vmatmul.mubr.msk.bf16.gmra.mrb[4].mxu0 %vm179_vm0, %v3071_v12  ;;  %511 = vmatpush1.bf16.msra.mxu1 %v3094_v22  ;;  %v3799_v22 = vld [vmem:[%s4517_s3 + $0x30] ss:$8 sps:$4 sm:$0xff]  }
  0x5f   :  { %2833 = vmatprep.mubr.msk.bf16.mxu0 %vm179_vm0, %v3072_v14  ;;  %2846 = vmatpush3.bf16.msra.mxu0 %v3087_v15  ;;  %v3788_v14 = vld [vmem:[%s4517_s3 + $0x34] ss:$8 sps:$4 sm:$0xff]  }
  0x60   :  { %2847 = vmatprep.subr.bf16.mxu0 %v3091_v18  ;;  %512 = vmatprep.subr.bf16.mxu1 %v3096_v25  ;;  %v3808_v25 = vld [vmem:[%s4517_s3 + $0x44] ss:$8 sps:$4 sm:$0xff]  }
  0x62   :  { %513 = vmatpush1.bf16.msra.mxu1 %v3098_v27 }
  0x63   :  { %2848 = vmatpush3.bf16.msra.mxu0 %v3091_v18  ;;  %514 = vmatprep.subr.bf16.mxu1 %v3100_v29 }
  0x64   :  { %2849 = vmatprep.subr.bf16.mxu0 %v3095_v23 }
  0x66   :  { %2834 = vmatmul.mubr.msk.bf16.gmra.mrb[8].mxu0 %vm179_vm0, %v3073_v21  ;;  %515 = vmatpush1.bf16.msra.mxu1 %v3102_v30  ;;  %v3817_v30 = vld [vmem:[%s4517_s3 + $0x40] ss:$8 sps:$4 sm:$0xff]  }
  0x67   :  { %2837 = vmatprep.mubr.msk.bf16.mxu0 %vm179_vm0, %v3074_v24  ;;  %2850 = vmatpush3.bf16.msra.mxu0 %v3095_v23  ;;  %v3802_v23 = vld [vmem:[#allocation6 + $0x18] sm:$0xff]  }
  0x68   :  { %2851 = vmatprep.subr.bf16.mxu0 %v3099_v26  ;;  %516 = vmatprep.subr.bf16.mxu1 %v3104_v32 }
  0x6a   :  { %517 = vmatpush1.bf16.msra.mxu1 %v3106_v33 }
  0x6b   :  { %2852 = vmatpush3.bf16.msra.mxu0 %v3099_v26  ;;  %2873 = vmatprep.subr.bf16.mxu1 %v4529_v37 }
  0x6c   :  { %2853 = vmatprep.subr.bf16.mxu0 %v3103_v31 }
  0x6e   :  { %2838 = vmatmul.mubr.msk.bf16.gmra.mrb[12].mxu0 %vm179_vm0, %v3075_v28 }
  0x6f   :  { %2854 = vmatpush3.bf16.msra.mxu0 %v3103_v31  ;;  %v3820_v31 = vld [vmem:[#allocation6 + $0x20] sm:$0xff]  }
  0x70   :  { %2855 = vmatprep.subr.bf16.mxu0 %v3107_v34 }
  0x73   :  { %2856 = vmatpush3.bf16.msra.mxu0 %v3107_v34  ;;  %v3827_v34 = vld [vmem:[%s4517_s3 + $0x54] ss:$8 sps:$4 sm:$0xff]  }
  0x74   :  { %876 = vmatprep.subr.bf16.mxu0 %v3725_v36 }
 0x129   :  { %v2827_v39 = vpop.f32.mrb[0].mxu0 }
 0x12a   :  { %v247_v40 = vadd.f32 %v2827_v39, %v3732_v38  ;;  %v238_v41 = vpop.f32.mrb[1].mxu0 }
 0x12b   :  { %v239_v42 = vadd.f32 %v3732_v38, %v238_v41  ;;  %v2828_v43 = vpop.f32.mrb[2].mxu0 }
 0x12c   :  { %v250_v44 = vadd.f32 %v2828_v43, %v3732_v38  ;;  %v241_v45 = vpop.f32.mrb[3].mxu0  ;;  %v303_v47 = vmax.f32 %v247_v40, 0.0 }
 0x12d   :  { %v242_v46 = vadd.f32 %v3732_v38, %v241_v45  ;;  %v301_v49 = vmax.f32 %v239_v42, 0.0 }
 0x12e   :  { %v304_v48 = vmax.f32 %v250_v44, 0.0 }
 0x12f   :  { %v302_v50 = vmax.f32 %v242_v46, 0.0  ;;  %v3839_v46 = vld [vmem:[%s4517_s3 + $0x50] ss:$8 sps:$4 sm:$0xff]  }
 0x130   :  { %v318_v51 = vpack.c.bf16 %v304_v48, %v303_v47  ;;  %v3842_v47 = vld [vmem:[#allocation6 + $0x28] sm:$0xff]  }
 0x131   :  { %v317_v53 = vpack.c.bf16 %v302_v50, %v301_v49  ;;  %v2831_v54 = vpop.f32.mrb[4].mxu0  ;;  %v3848_v49 = vld [vmem:[%s4517_s3 + $0x64] ss:$8 sps:$4 sm:$0xff]  }
 0x132   :  { %v263_v56 = vadd.f32 %v2831_v54, %v3732_v38  ;;  %v254_v57 = vpop.f32.mrb[5].mxu0  ;;  %v3864_v54 = vld [vmem:[%s4517_s3 + $0x74] ss:$8 sps:$4 sm:$0xff]  }
 0x133   :  { %v255_v59 = vadd.f32 %v3732_v38, %v254_v57  ;;  %v2832_v60 = vpop.f32.mrb[6].mxu0  ;;  %535 = vmatmul.mubr.bf16.vlgmr.msra.gmra.mrb[0].mxu1 %v317_v53  ;;  %2857 = vmatprep.mubr.bf16.mxu0 %v317_v53  ;;  %v3857_v53 = vld [vmem:[%s4517_s3 + $0x60] ss:$8 sps:$4 sm:$0xff]   ;;  %v3876_v57 = vld [vmem:[%s4517_s3 + $0x70] ss:$8 sps:$4 sm:$0xff]  }
 0x134   :  { %v307_v61 = vmax.f32 %v263_v56, 0.0  ;;  %v266_v62 = vadd.f32 %v2832_v60, %v3732_v38  ;;  %2874 = vmatpush3.bf16.msra.mxu1 %v3738_v52  ;;  %v257_v63 = vpop.f32.mrb[7].mxu0  ;;  %2858 = vmatmul.mubr.bf16.vlgmr.msra.gmra.mrb[16].mxu0 %v318_v51  ;;  %v3867_v56 = vld [vmem:[#allocation6 + $0x30] sm:$0xff]   ;;  %v3501_v60 = vmov 0.0|0.0  }
 0x135   :  { %v305_v1 = vmax.f32 %v255_v59, 0.0  ;;  %v258_v2 = vadd.f32 %v3732_v38, %v257_v63  ;;  %877 = vmatpush1.bf16.msra.mxu0 %v3743_v55  ;;  %544 = vmatprep.mubr.bf16.mxu1 %v4527_v35  ;;  %v3881_v59 = vld [vmem:[#allocation6 + $0x38] sm:$0xff]  }
 0x136   :  { %v308_v4 = vmax.f32 %v266_v62, 0.0  ;;  %878 = vmatprep.subr.bf16.mxu0 %v3749_v58  ;;  %2875 = vmatprep.subr.bf16.mxu1 %v4529_v37 }
 0x137   :  { %v306_v6 = vmax.f32 %v258_v2, 0.0 }
 0x138   :  { %v3771_v7 = vpack.c.bf16 %v308_v4, %v307_v61  ;;  %2876 = vmatpush3.bf16.msra.mxu1 %v3754_v0  ;;  %v359_v61 = vlaneseq }
 0x139   :  { %v319_v8 = vpack.c.bf16 %v306_v6, %v305_v1  ;;  %v2835_v9 = vpop.f32.mrb[8].mxu0  ;;  %879 = vmatpush1.bf16.msra.mxu0 %v3761_v3  ;;  %2877 = vmatprep.subr.bf16.mxu1 %v4529_v37  ;;  %v357_v1 = vld [vmem:[%s4521_s7] ss:$2 sm:$0x7] }
 0x13a   :  { %v279_v12 = vadd.f32 %v2835_v9, %v3732_v38  ;;  %v270_v13 = vpop.f32.mrb[9].mxu0  ;;  %880 = vmatprep.subr.bf16.mxu0 %v3769_v5  ;;  %v3930_v62 = vshrl.u32 %v359_v61, 7 }
 0x13b   :  { %v271_v15 = vadd.f32 %v3732_v38, %v270_v13  ;;  %v2836_v16 = vpop.f32.mrb[10].mxu0  ;;  %545 = vmatmul.mubr.bf16.gmra.mrb[4].mxu1 %v318_v51  ;;  %2861 = vmatprep.mubr.bf16.mxu0 %v319_v8 }
 0x13c   :  { %v311_v17 = vmax.f32 %v279_v12, 0.0  ;;  %v282_v18 = vadd.f32 %v2836_v16, %v3732_v38  ;;  %v273_v19 = vpop.f32.mrb[11].mxu0  ;;  %2862 = vmatmul.mubr.bf16.gmra.mrb[20].mxu0 %v3771_v7  ;;  %554 = vmatprep.mubr.bf16.mxu1 %v4527_v35  ;;  %4542 = vst [vmem:[#allocation15_spill] sm:$0xff] %v3930_v62  ;;  %v4524_v63 = vsub.s32 2, %v3930_v62  ;;  %v4526_v2 = vsub.s32 0, %v3930_v62 }
 0x13d   :  { %v309_v20 = vmax.f32 %v271_v15, 0.0  ;;  %v274_v21 = vadd.f32 %v3732_v38, %v273_v19  ;;  %881 = vmatpush1.bf16.msra.mxu0 %v3778_v10  ;;  %2878 = vmatpush3.bf16.msra.mxu1 %v3781_v11  ;;  %v4525_v4 = vsub.s32 1, %v3930_v62 }
 0x13e   :  { %v312_v24 = vmax.f32 %v282_v18, 0.0  ;;  %882 = vmatprep.subr.bf16.mxu0 %v3788_v14  ;;  %2879 = vmatprep.subr.bf16.mxu1 %v4529_v37  ;;  %v3940_v6 = vrot.slane %v357_v1, %v4524_v63 }
 0x13f   :  { %v310_v26 = vmax.f32 %v274_v21, 0.0  ;;  %v3948_v9 = vrot.slane %v357_v1, %v4525_v4 }
 0x140   :  { %v3811_v27 = vpack.c.bf16 %v312_v24, %v311_v17 }
 0x141   :  { %v321_v28 = vpack.c.bf16 %v310_v26, %v309_v20  ;;  %v2839_v29 = vpop.f32.mrb[12].mxu0  ;;  %883 = vmatpush1.bf16.msra.mxu0 %v3799_v22  ;;  %2880 = vmatpush3.bf16.msra.mxu1 %v3802_v23 }
 0x142   :  { %v295_v32 = vadd.f32 %v2839_v29, %v3732_v38  ;;  %v286_v33 = vpop.f32.mrb[13].mxu0  ;;  %884 = vmatprep.subr.bf16.mxu0 %v3808_v25  ;;  %2881 = vmatprep.subr.bf16.mxu1 %v4529_v37 }
 0x143   :  { %v287_v39 = vadd.f32 %v3732_v38, %v286_v33  ;;  %v2840_v40 = vpop.f32.mrb[14].mxu0  ;;  %555 = vmatmul.mubr.bf16.gmra.mrb[8].mxu1 %v319_v8  ;;  %2865 = vmatprep.mubr.bf16.mxu0 %v321_v28 }
 0x144   :  { %v315_v41 = vmax.f32 %v295_v32, 0.0  ;;  %v298_v42 = vadd.f32 %v2840_v40, %v3732_v38  ;;  %v289_v43 = vpop.f32.mrb[15].mxu0  ;;  %2866 = vmatmul.mubr.bf16.gmra.mrb[24].mxu0 %v3811_v27  ;;  %564 = vmatprep.mubr.bf16.mxu1 %v4527_v35 }
 0x145   :  { %v313_v44 = vmax.f32 %v287_v39, 0.0  ;;  %v290_v45 = vadd.f32 %v3732_v38, %v289_v43  ;;  %885 = vmatpush1.bf16.msra.mxu0 %v3817_v30  ;;  %2882 = vmatpush3.bf16.msra.mxu1 %v3820_v31 }
 0x146   :  { %v316_v48 = vmax.f32 %v298_v42, 0.0  ;;  %886 = vmatprep.subr.bf16.mxu0 %v3827_v34  ;;  %2883 = vmatprep.subr.bf16.mxu1 %v4529_v37 }
 0x147   :  { %v314_v38 = vmax.f32 %v290_v45, 0.0 }
 0x148   :  { %v3851_v50 = vpack.c.bf16 %v316_v48, %v315_v41 }
 0x149   :  { %v323_v51 = vpack.c.bf16 %v314_v38, %v313_v44  ;;  %887 = vmatpush1.bf16.msra.mxu0 %v3839_v46  ;;  %2884 = vmatpush3.bf16.msra.mxu1 %v3842_v47 }
 0x14a   :  { %4541 = vst [vmem:[#allocation14_spill] sm:$0xff] %v3851_v50  ;;  %888 = vmatprep.subr.bf16.mxu0 %v3848_v49  ;;  %2885 = vmatprep.subr.bf16.mxu1 %v4529_v37 }
 0x14b   :  { %565 = vmatmul.mubr.bf16.gmra.mrb[12].mxu1 %v3771_v7  ;;  %2869 = vmatprep.mubr.bf16.mxu0 %v323_v51  ;;  %v3944_v7 = vrot.slane %v357_v1, %v4526_v2 }
 0x14c   :  { %2870 = vmatmul.mubr.bf16.gmra.mrb[28].mxu0 %v3851_v50  ;;  %574 = vmatprep.mubr.bf16.mxu1 %v4527_v35 }
 0x14d   :  { %889 = vmatpush1.bf16.msra.mxu0 %v3857_v53  ;;  %908 = vmatprep.mubr.bf16.mxu0 %v4527_v35 }
 0x14e   :  { %890 = vmatprep.subr.bf16.mxu0 %v3864_v54  ;;  %2886 = vmatpush3.bf16.msra.mxu1 %v3867_v56 }
 0x14f   :  { %2887 = vmatprep.subr.bf16.mxu1 %v4529_v37 }
 0x151   :  { %891 = vmatpush1.bf16.msra.mxu0 %v3876_v57 }
 0x152   :  { %2888 = vmatpush3.bf16.msra.mxu1 %v3881_v59  ;;  %1079 = vmatprep.subr.bf16.mxu0 %v3725_v36 }
 0x153   :  { %575 = vmatmul.mubr.bf16.gmra.mrb[16].mxu1 %v321_v28  ;;  %2893 = vmatprep.subr.bf16.mxu1 %v4529_v37 }
 0x154   :  { %909 = vmatmul.mubr.bf16.vlgmr.msra.gmra.mrb[32].mxu0 %v3501_v60  ;;  %584 = vmatprep.mubr.bf16.mxu1 %v4527_v35 }
 0x155   :  { %1080 = vmatpush1.bf16.msra.mxu0 %v3743_v55  ;;  %1111 = vmatprep.mubr.bf16.mxu0 %v4527_v35 }
 0x156   :  { %1081 = vmatprep.subr.bf16.mxu0 %v3749_v58 }
 0x159   :  { %1082 = vmatpush1.bf16.msra.mxu0 %v3761_v3 }
 0x15a   :  { %1083 = vmatprep.subr.bf16.mxu0 %v3769_v5 }
 0x15b   :  { %585 = vmatmul.mubr.bf16.gmra.mrb[20].mxu1 %v3811_v27 }
 0x15c   :  { %594 = vmatprep.mubr.bf16.mxu1 %v4527_v35 }
 0x15d   :  { %1084 = vmatpush1.bf16.msra.mxu0 %v3778_v10 }
 0x15e   :  { %1085 = vmatprep.subr.bf16.mxu0 %v3788_v14 }
 0x161   :  { %1086 = vmatpush1.bf16.msra.mxu0 %v3799_v22 }
 0x162   :  { %1087 = vmatprep.subr.bf16.mxu0 %v3808_v25 }
 0x163   :  { %595 = vmatmul.mubr.bf16.gmra.mrb[24].mxu1 %v323_v51 }
 0x164   :  { %604 = vmatprep.mubr.bf16.mxu1 %v4527_v35 }
 0x165   :  { %1088 = vmatpush1.bf16.msra.mxu0 %v3817_v30 }
 0x166   :  { %1089 = vmatprep.subr.bf16.mxu0 %v3827_v34 }
 0x169   :  { %1090 = vmatpush1.bf16.msra.mxu0 %v3839_v46 }
 0x16a   :  { %1091 = vmatprep.subr.bf16.mxu0 %v3848_v49 }
 0x16b   :  { %605 = vmatmul.mubr.bf16.gmra.mrb[28].mxu1 %v3851_v50 }
 0x16c   :  { %2889 = vmatprep.mubr.msk.bf16.mxu1 %vm3502_vm1, %v4529_v37 }
 0x16d   :  { %1092 = vmatpush1.bf16.msra.mxu0 %v3857_v53 }
 0x16e   :  { %1093 = vmatprep.subr.bf16.mxu0 %v3864_v54 }
 0x171   :  { %1094 = vmatpush1.bf16.msra.mxu0 %v3876_v57 }
 0x172   :  { %1218 = vmatprep.subr.bf16.mxu0 %v3725_v36 }
 0x173   :  { %2890 = vmatmul.mubr.bf16.vlgmr.msra.gmra.mrb[32].mxu1 %v3501_v60 }
 0x174   :  { %2894 = vmatpush3.bf16.msra.mxu1 %v3738_v52  ;;  %2909 = vmatprep.mubr.msk.bf16.mxu1 %vm3502_vm1, %v4529_v37 }
 0x175   :  { %2895 = vmatprep.subr.bf16.mxu1 %v4529_v37 }
 0x178   :  { %2896 = vmatpush3.bf16.msra.mxu1 %v3754_v0 }
 0x179   :  { %2897 = vmatprep.subr.bf16.mxu1 %v4529_v37 }
 0x17c   :  { %2898 = vmatpush3.bf16.msra.mxu1 %v3781_v11 }
 0x17d   :  { %2899 = vmatprep.subr.bf16.mxu1 %v4529_v37 }
 0x180   :  { %2900 = vmatpush3.bf16.msra.mxu1 %v3802_v23 }
 0x181   :  { %2901 = vmatprep.subr.bf16.mxu1 %v4529_v37 }
 0x184   :  { %2902 = vmatpush3.bf16.msra.mxu1 %v3820_v31 }
 0x185   :  { %2903 = vmatprep.subr.bf16.mxu1 %v4529_v37 }
 0x188   :  { %2904 = vmatpush3.bf16.msra.mxu1 %v3842_v47 }
 0x189   :  { %2905 = vmatprep.subr.bf16.mxu1 %v4529_v37 }
 0x18c   :  { %2906 = vmatpush3.bf16.msra.mxu1 %v3867_v56 }
 0x18d   :  { %2907 = vmatprep.subr.bf16.mxu1 %v4529_v37 }
 0x190   :  { %2908 = vmatpush3.bf16.msra.mxu1 %v3881_v59 }
 0x191   :  { %2913 = vmatprep.subr.bf16.mxu1 %v4529_v37 }
 0x206   :  { %v536_v8 = vpop.f32.mrb[0].mxu1 }
 0x207   :  { %v538_v12 = vpop.f32.mrb[1].mxu1  ;;  %v2859_v13 = vpop.f32.mrb[16].mxu0  ;;  %v537_v18 = vadd.f32 %v536_v8, %v3944_v7 }
 0x208   :  { %v658_v15 = vadd.f32 %v2859_v13, %v3940_v6  ;;  %v540_v16 = vpop.f32.mrb[2].mxu1  ;;  %v649_v17 = vpop.f32.mrb[17].mxu0  ;;  %v539_v24 = vadd.f32 %v538_v12, %v3948_v9 }
 0x209   :  { %v541_v19 = vadd.f32 %v540_v16, %v3944_v7  ;;  %v542_v20 = vpop.f32.mrb[3].mxu1  ;;  %v2860_v21 = vpop.f32.mrb[18].mxu0  ;;  %v650_v32 = vadd.f32 %v649_v17, %v3940_v6 }
 0x20a   :  { %v543_v26 = vadd.f32 %v542_v20, %v3948_v9  ;;  %v661_v27 = vadd.f32 %v2860_v21, %v3940_v6  ;;  %v652_v28 = vpop.f32.mrb[19].mxu0 }
 0x20b   :  { %v3956_v29 = vpack.c.bf16 %v541_v19, %v537_v18  ;;  %v653_v33 = vadd.f32 %v652_v28, %v3940_v6 }
 0x20c   :  { %v3960_v39 = vpack.c.bf16 %v543_v26, %v539_v24  ;;  %v3962_v40 = vpack.c.bf16 %v661_v27, %v658_v15 }
 0x20d   :  { %v3964_v41 = vpack.c.bf16 %v653_v33, %v650_v32 }
 0x20e   :  { %v546_v42 = vpop.f32.mrb[4].mxu1 }
 0x20f   :  { %v547_v43 = vadd.f32 %v546_v42, %v3944_v7  ;;  %v548_v44 = vpop.f32.mrb[5].mxu1  ;;  %v2863_v45 = vpop.f32.mrb[20].mxu0 }
 0x210   :  { %v549_v48 = vadd.f32 %v548_v44, %v3948_v9  ;;  %v674_v38 = vadd.f32 %v2863_v45, %v3940_v6  ;;  %v550_v51 = vpop.f32.mrb[6].mxu1  ;;  %v665_v60 = vpop.f32.mrb[21].mxu0 }
 0x211   :  { %v551_v61 = vadd.f32 %v550_v51, %v3944_v7  ;;  %v666_v1 = vadd.f32 %v665_v60, %v3940_v6  ;;  %v552_v8 = vpop.f32.mrb[7].mxu1  ;;  %v2864_v12 = vpop.f32.mrb[22].mxu0 }
 0x212   :  { %v553_v13 = vadd.f32 %v552_v8, %v3948_v9  ;;  %v677_v15 = vadd.f32 %v2864_v12, %v3940_v6  ;;  %v668_v16 = vpop.f32.mrb[23].mxu0 }
 0x213   :  { %v3973_v17 = vpack.c.bf16 %v551_v61, %v547_v43  ;;  %v669_v18 = vadd.f32 %v668_v16, %v3940_v6 }
 0x214   :  { %v3976_v19 = vpack.c.bf16 %v553_v13, %v549_v48  ;;  %v3978_v20 = vpack.c.bf16 %v677_v15, %v674_v38 }
 0x215   :  { %v3980_v21 = vpack.c.bf16 %v669_v18, %v666_v1 }
 0x216   :  { %v556_v24 = vpop.f32.mrb[8].mxu1 }
 0x217   :  { %v557_v26 = vadd.f32 %v556_v24, %v3944_v7  ;;  %v558_v27 = vpop.f32.mrb[9].mxu1  ;;  %v2867_v28 = vpop.f32.mrb[24].mxu0 }
 0x218   :  { %v559_v32 = vadd.f32 %v558_v27, %v3948_v9  ;;  %v690_v33 = vadd.f32 %v2867_v28, %v3940_v6  ;;  %v560_v42 = vpop.f32.mrb[10].mxu1  ;;  %v681_v43 = vpop.f32.mrb[25].mxu0 }
 0x219   :  { %v561_v44 = vadd.f32 %v560_v42, %v3944_v7  ;;  %v682_v45 = vadd.f32 %v681_v43, %v3940_v6  ;;  %v562_v48 = vpop.f32.mrb[11].mxu1  ;;  %v2868_v38 = vpop.f32.mrb[26].mxu0 }
 0x21a   :  { %v563_v51 = vadd.f32 %v562_v48, %v3948_v9  ;;  %v693_v60 = vadd.f32 %v2868_v38, %v3940_v6  ;;  %v684_v61 = vpop.f32.mrb[27].mxu0 }
 0x21b   :  { %v3989_v1 = vpack.c.bf16 %v561_v44, %v557_v26  ;;  %v685_v8 = vadd.f32 %v684_v61, %v3940_v6 }
 0x21c   :  { %v3992_v12 = vpack.c.bf16 %v563_v51, %v559_v32  ;;  %v3994_v13 = vpack.c.bf16 %v693_v60, %v690_v33 }
 0x21d   :  { %v3996_v15 = vpack.c.bf16 %v685_v8, %v682_v45 }
 0x21e   :  { %v566_v16 = vpop.f32.mrb[12].mxu1 }
 0x21f   :  { %v567_v18 = vadd.f32 %v566_v16, %v3944_v7  ;;  %v568_v24 = vpop.f32.mrb[13].mxu1  ;;  %v2871_v27 = vpop.f32.mrb[28].mxu0 }
 0x220   :  { %v569_v28 = vadd.f32 %v568_v24, %v3948_v9  ;;  %v706_v42 = vadd.f32 %v2871_v27, %v3940_v6  ;;  %v570_v43 = vpop.f32.mrb[14].mxu1  ;;  %v697_v26 = vpop.f32.mrb[29].mxu0 }
 0x221   :  { %v571_v44 = vadd.f32 %v570_v43, %v3944_v7  ;;  %v698_v32 = vadd.f32 %v697_v26, %v3940_v6  ;;  %v572_v48 = vpop.f32.mrb[15].mxu1  ;;  %v2872_v33 = vpop.f32.mrb[30].mxu0  ;;  %v773_v43 = vunpack.c.l.bf16 %v3956_v29 }
 0x222   :  { %v573_v45 = vadd.f32 %v572_v48, %v3948_v9  ;;  %v709_v38 = vadd.f32 %v2872_v33, %v3940_v6  ;;  %v700_v51 = vpop.f32.mrb[31].mxu0  ;;  %v774_v33 = vunpack.c.l.bf16 %v3960_v39 }
 0x223   :  { %v4005_v60 = vpack.c.bf16 %v571_v44, %v567_v18  ;;  %v701_v61 = vadd.f32 %v700_v51, %v3940_v6  ;;  %v777_v51 = vunpack.c.h.bf16 %v3960_v39 }
 0x224   :  { %v4008_v8 = vpack.c.bf16 %v573_v45, %v569_v28  ;;  %v4010_v16 = vpack.c.bf16 %v709_v38, %v706_v42  ;;  %v776_v28 = vunpack.c.h.bf16 %v3956_v29 }
 0x225   :  { %v4012_v24 = vpack.c.bf16 %v701_v61, %v698_v32 }
 0x226   :  { %4543 = vst [vmem:[#allocation16_spill] sm:$0xff] %v4010_v16  ;;  %v576_v27 = vpop.f32.mrb[16].mxu1 }
 0x227   :  { %4544 = vst [vmem:[#allocation17_spill] sm:$0xff] %v4012_v24  ;;  %v577_v26 = vadd.f32 %v576_v27, %v3944_v7  ;;  %v578_v63 = vpop.f32.mrb[17].mxu1  ;;  %v910_v48 = vpop.f32.mrb[32].mxu0 }
 0x228   :  { %v579_v18 = vadd.f32 %v578_v63, %v3948_v9  ;;  %v935_v44 = vadd.f32 %v910_v48, %v773_v43  ;;  %v580_v4 = vpop.f32.mrb[18].mxu1  ;;  %v912_v6 = vpop.f32.mrb[33].mxu0 }
 0x229   :  { %v581_v42 = vadd.f32 %v580_v4, %v3944_v7  ;;  %v949_v32 = vadd.f32 %v912_v6, %v774_v33  ;;  %v582_v45 = vpop.f32.mrb[19].mxu1  ;;  %v914_v38 = vpop.f32.mrb[34].mxu0 }
 0x22a   :  { %v2602_v61 = vmul.f32 -1.442695, %v935_v44  ;;  %v583_v27 = vadd.f32 %v582_v45, %v3948_v9  ;;  %v936_v2 = vadd.f32 %v914_v38, %v776_v28  ;;  %v916_v35 = vpop.f32.mrb[35].mxu0 }
 0x22b   :  { %v4022_v37 = vpack.c.bf16 %v581_v42, %v577_v26  ;;  %v950_v63 = vadd.f32 %v916_v35, %v777_v51  ;;  %v2604_v35 = vmul.f32 -1.442695, %v949_v32 }
 0x22c   :  { %v4024_v43 = vpack.c.bf16 %v583_v27, %v579_v18  ;;  %v2603_v48 = vmul.f32 -1.442695, %v936_v2  ;;  %3188 = vpow2.f32 %v2602_v61 }
 0x22d   :  { %v2605_v2 = vmul.f32 -1.442695, %v950_v63 }
 0x22e   :  { %v586_v29 = vpop.f32.mrb[20].mxu1  ;;  %3190 = vpow2.f32 %v2603_v48 }
 0x22f   :  { %v587_v4 = vadd.f32 %v586_v29, %v3944_v7  ;;  %v588_v33 = vpop.f32.mrb[21].mxu1  ;;  %3192 = vpow2.f32 %v2604_v35 }
 0x230   :  { %v589_v6 = vadd.f32 %v588_v33, %v3948_v9  ;;  %v590_v39 = vpop.f32.mrb[22].mxu1  ;;  %3194 = vpow2.f32 %v2605_v2 }
 0x231   :  { %v591_v44 = vadd.f32 %v590_v39, %v3944_v7  ;;  %v592_v45 = vpop.f32.mrb[23].mxu1 }
 0x232   :  { %v593_v28 = vadd.f32 %v592_v45, %v3948_v9 }
 0x233   :  { %v4030_v26 = vpack.c.bf16 %v591_v44, %v587_v4 }
 0x234   :  { %v4032_v18 = vpack.c.bf16 %v593_v28, %v589_v6 }
 0x236   :  { %v596_v42 = vpop.f32.mrb[24].mxu1  ;;  %v3189_v38 = vpop.eup %3188 }
 0x237   :  { %v597_v51 = vadd.f32 %v596_v42, %v3944_v7  ;;  %v598_v61 = vpop.f32.mrb[25].mxu1  ;;  %v943_v45 = vadd.f32 1.0, %v3189_v38 }
 0x238   :  { %v599_v27 = vadd.f32 %v598_v61, %v3948_v9  ;;  %v600_v48 = vpop.f32.mrb[26].mxu1  ;;  %v3191_v29 = vpop.eup %3190 }
 0x239   :  { %v601_v33 = vadd.f32 %v600_v48, %v3944_v7  ;;  %v602_v39 = vpop.f32.mrb[27].mxu1  ;;  %v944_v63 = vadd.f32 1.0, %v3191_v29  ;;  %3196 = vrcp.f32 %v943_v45  ;;  %v3193_v2 = vpop.eup %3192 }
 0x23a   :  { %v603_v32 = vadd.f32 %v602_v39, %v3948_v9  ;;  %v3195_v29 = vpop.eup %3194  ;;  %v957_v45 = vadd.f32 1.0, %v3193_v2 }
 0x23b   :  { %v4038_v4 = vpack.c.bf16 %v601_v33, %v597_v51  ;;  %3198 = vrcp.f32 %v944_v63  ;;  %v4053_v33 = vld [vmem:[%s4522_s8 + $0x1] ss:$0 sm:$0xff]  ;;  %v958_v63 = vadd.f32 1.0, %v3195_v29 }
 0x23c   :  { %v4040_v6 = vpack.c.bf16 %v603_v32, %v599_v27  ;;  %3200 = vrcp.f32 %v957_v45 }
 0x23d   :  { %4545 = vst [vmem:[#allocation18_spill] sm:$0xff] %v4038_v4  ;;  %3202 = vrcp.f32 %v958_v63  ;;  %v1073_v63 = vunpack.c.l.bf16 %v3976_v19 }
 0x23e   :  { %4546 = vst [vmem:[#allocation19_spill] sm:$0xff] %v4040_v6  ;;  %v606_v44 = vpop.f32.mrb[28].mxu1 }
 0x23f   :  { %v607_v28 = vadd.f32 %v606_v44, %v3944_v7  ;;  %v608_v35 = vpop.f32.mrb[29].mxu1 }
 0x240   :  { %v609_v42 = vadd.f32 %v608_v35, %v3948_v9  ;;  %v610_v61 = vpop.f32.mrb[30].mxu1 }
 0x241   :  { %v611_v48 = vadd.f32 %v610_v61, %v3944_v7  ;;  %v612_v38 = vpop.f32.mrb[31].mxu1 }
 0x242   :  { %v613_v39 = vadd.f32 %v612_v38, %v3948_v9  ;;  %v775_v9 = vunpack.c.l.bf16 %v3964_v41 }
 0x243   :  { %v4046_v51 = vpack.c.bf16 %v611_v48, %v607_v28  ;;  %v3197_v35 = vpop.eup %3196 }
 0x244   :  { %v4048_v27 = vpack.c.bf16 %v613_v39, %v609_v42  ;;  %v778_v39 = vunpack.c.h.bf16 %v3964_v41 }
 0x245   :  { %4547 = vst [vmem:[#allocation20_spill] sm:$0xff] %v4046_v51  ;;  %v3199_v38 = vpop.eup %3198 }
 0x246   :  { %4548 = vst [vmem:[#allocation21_spill] sm:$0xff] %v4048_v27  ;;  %v1045_v32 = vpop.f32.mrb[32].mxu1 }
 0x247   :  { %v1046_v44 = vadd.f32 %v4053_v33, %v1045_v32  ;;  %v2891_v7 = vpop.f32.mrb[33].mxu1  ;;  %v3201_v32 = vpop.eup %3200 }
 0x248   :  { %v1048_v61 = vpop.f32.mrb[34].mxu1  ;;  %v3203_v7 = vpop.eup %3202  ;;  %v1058_v16 = vsub.f32 1.0, %v3201_v32  ;;  %v1062_v45 = vmul.f32 0.0, %v3201_v32  ;;  %v1076_v32 = vunpack.c.h.bf16 %v3976_v19 }
 0x249   :  { %v1052_v28 = vmul.f32 %v3197_v35, %v1046_v44  ;;  %v1049_v42 = vadd.f32 %v4053_v33, %v1048_v61  ;;  %v2892_v48 = vpop.f32.mrb[35].mxu1  ;;  %v1059_v51 = vsub.f32 1.0, %v3203_v7  ;;  %v1063_v61 = vmul.f32 0.0, %v3203_v7 }
 0x24b   :  { %v1054_v62 = vadd.f32 %v1052_v28, %v775_v9  ;;  %v1053_v2 = vmul.f32 %v3199_v38, %v1049_v42  ;;  %v1075_v38 = vunpack.c.h.bf16 %v3973_v17 }
 0x24d   :  { %3204 = vtanh.f32 %v1054_v62  ;;  %v1055_v29 = vadd.f32 %v1053_v2, %v778_v39  ;;  %v4549_v62 = vmov 0.0  }
 0x24f   :  { %3206 = vtanh.f32 %v1055_v29 }
 0x257   :  { %v3205_v27 = vpop.eup %3204 }
 0x258   :  { %v1060_v50 = vmul.f32 %v3205_v27, %v1058_v16  ;;  %v4550_v16 = vmov 0  }
 0x259   :  { %v3207_v44 = vpop.eup %3206 }
 0x25a   :  { %v1061_v35 = vmul.f32 %v3207_v44, %v1059_v51  ;;  %v4059_v48 = vadd.f32 %v1062_v45, %v1060_v50  ;;  %v1072_v50 = vunpack.c.l.bf16 %v3973_v17 }
 0x25c   :  { %v4061_v24 = vadd.f32 %v1063_v61, %v1061_v35 }
 0x25e   :  { %v1078_v41 = vpack.c.bf16 %v4061_v24, %v4059_v48 }
 0x260   :  { %1112 = vmatmul.mubr.bf16.vlgmr.msra.gmra.mrb[36].mxu0 %v1078_v41  ;;  %2910 = vmatmul.mubr.bf16.vlgmr.msra.gmra.mrb[36].mxu1 %v1078_v41 }
 0x261   :  { %1219 = vmatpush1.bf16.msra.mxu0 %v3743_v55  ;;  %2914 = vmatpush3.bf16.msra.mxu1 %v3738_v52 }
 0x262   :  { %1220 = vmatprep.subr.bf16.mxu0 %v3749_v58  ;;  %2915 = vmatprep.subr.bf16.mxu1 %v4549_v62 }
 0x263   :  { %1250 = vmatprep.mubr.bf16.mxu0 %v4550_v16  ;;  %2929 = vmatprep.mubr.msk.bf16.mxu1 %vm3502_vm1, %v4549_v62 }
 0x265   :  { %1221 = vmatpush1.bf16.msra.mxu0 %v3761_v3  ;;  %2916 = vmatpush3.bf16.msra.mxu1 %v3754_v0 }
 0x266   :  { %1222 = vmatprep.subr.bf16.mxu0 %v3769_v5  ;;  %2917 = vmatprep.subr.bf16.mxu1 %v4549_v62 }
 0x269   :  { %1223 = vmatpush1.bf16.msra.mxu0 %v3778_v10  ;;  %2918 = vmatpush3.bf16.msra.mxu1 %v3781_v11 }
 0x26a   :  { %1224 = vmatprep.subr.bf16.mxu0 %v3788_v14  ;;  %2919 = vmatprep.subr.bf16.mxu1 %v4549_v62 }
 0x26d   :  { %1225 = vmatpush1.bf16.msra.mxu0 %v3799_v22  ;;  %2920 = vmatpush3.bf16.msra.mxu1 %v3802_v23 }
 0x26e   :  { %1226 = vmatprep.subr.bf16.mxu0 %v3808_v25  ;;  %2921 = vmatprep.subr.bf16.mxu1 %v4549_v62 }
 0x271   :  { %1227 = vmatpush1.bf16.msra.mxu0 %v3817_v30  ;;  %2922 = vmatpush3.bf16.msra.mxu1 %v3820_v31 }
 0x272   :  { %1228 = vmatprep.subr.bf16.mxu0 %v3827_v34  ;;  %2923 = vmatprep.subr.bf16.mxu1 %v4549_v62 }
 0x275   :  { %1229 = vmatpush1.bf16.msra.mxu0 %v3839_v46  ;;  %2924 = vmatpush3.bf16.msra.mxu1 %v3842_v47 }
 0x276   :  { %1230 = vmatprep.subr.bf16.mxu0 %v3848_v49  ;;  %2925 = vmatprep.subr.bf16.mxu1 %v4549_v62 }
 0x279   :  { %1231 = vmatpush1.bf16.msra.mxu0 %v3857_v53  ;;  %2926 = vmatpush3.bf16.msra.mxu1 %v3867_v56 }
 0x27a   :  { %1232 = vmatprep.subr.bf16.mxu0 %v3864_v54  ;;  %2927 = vmatprep.subr.bf16.mxu1 %v4549_v62 }
 0x27d   :  { %1233 = vmatpush1.bf16.msra.mxu0 %v3876_v57  ;;  %2928 = vmatpush3.bf16.msra.mxu1 %v3881_v59 }
 0x27e   :  { %1357 = vmatprep.subr.bf16.mxu0 %v3725_v36  ;;  %2933 = vmatprep.subr.bf16.mxu1 %v4549_v62 }
 0x333   :  { %v1113_v51 = vpop.f32.mrb[36].mxu0  ;;  %v1184_v27 = vpop.f32.mrb[36].mxu1 }
 0x334   :  { %v1122_v9 = vadd.f32 %v1113_v51, %v1072_v50  ;;  %v1115_v28 = vpop.f32.mrb[37].mxu0  ;;  %v2911_v42 = vpop.f32.mrb[37].mxu1 }
 0x335   :  { %v1136_v39 = vadd.f32 %v1115_v28, %v1073_v63  ;;  %v1117_v2 = vpop.f32.mrb[38].mxu0  ;;  %v1187_v29 = vpop.f32.mrb[38].mxu1  ;;  %v1185_v42 = vadd.f32 %v4053_v33, %v1184_v27 }
 0x336   :  { %v2614_v7 = vmul.f32 -1.442695, %v1122_v9  ;;  %v1123_v45 = vadd.f32 %v1117_v2, %v1075_v38  ;;  %v1119_v44 = vpop.f32.mrb[39].mxu0  ;;  %v2912_v35 = vpop.f32.mrb[39].mxu1 }
 0x337   :  { %v1137_v61 = vadd.f32 %v1119_v44, %v1076_v32  ;;  %v2616_v6 = vmul.f32 -1.442695, %v1136_v39  ;;  %v1074_v32 = vunpack.c.l.bf16 %v3962_v40  ;;  %v1077_v39 = vunpack.c.h.bf16 %v3962_v40 }
 0x338   :  { %3208 = vpow2.f32 %v2614_v7  ;;  %v2615_v41 = vmul.f32 -1.442695, %v1123_v45 }
 0x339   :  { %v2617_v4 = vmul.f32 -1.442695, %v1137_v61 }
 0x33a   :  { %3210 = vpow2.f32 %v2615_v41 }
 0x33b   :  { %3212 = vpow2.f32 %v2616_v6  ;;  %v1188_v6 = vadd.f32 %v4053_v33, %v1187_v29 }
 0x33c   :  { %3214 = vpow2.f32 %v2617_v4 }
 0x342   :  { %v3209_v50 = vpop.eup %3208 }
 0x343   :  { %v1130_v51 = vadd.f32 1.0, %v3209_v50 }
 0x344   :  { %v3211_v17 = vpop.eup %3210 }
 0x345   :  { %3216 = vrcp.f32 %v1130_v51  ;;  %v1131_v63 = vadd.f32 1.0, %v3211_v17  ;;  %v3213_v28 = vpop.eup %3212 }
 0x346   :  { %v3215_v19 = vpop.eup %3214  ;;  %v1144_v9 = vadd.f32 1.0, %v3213_v28 }
 0x347   :  { %3218 = vrcp.f32 %v1131_v63  ;;  %v1145_v38 = vadd.f32 1.0, %v3215_v19 }
 0x348   :  { %3220 = vrcp.f32 %v1144_v9 }
 0x349   :  { %3222 = vrcp.f32 %v1145_v38  ;;  %v1215_v38 = vunpack.c.h.bf16 %v3992_v12 }
 0x34f   :  { %v3217_v2 = vpop.eup %3216 }
 0x350   :  { %v1191_v7 = vmul.f32 %v3217_v2, %v1185_v42 }
 0x351   :  { %v3219_v4 = vpop.eup %3218 }
 0x352   :  { %v1193_v45 = vadd.f32 %v1191_v7, %v1074_v32  ;;  %v1192_v44 = vmul.f32 %v3219_v4, %v1188_v6  ;;  %v3221_v61 = vpop.eup %3220 }
 0x353   :  { %v3223_v41 = vpop.eup %3222  ;;  %v1197_v27 = vsub.f32 1.0, %v3221_v61  ;;  %v1201_v63 = vmul.f32 %v3221_v61, %v4059_v48 }
 0x354   :  { %3224 = vtanh.f32 %v1193_v45  ;;  %v1194_v35 = vadd.f32 %v1192_v44, %v1077_v39  ;;  %v1198_v51 = vsub.f32 1.0, %v3223_v41  ;;  %v1202_v29 = vmul.f32 %v3223_v41, %v4061_v24 }
 0x356   :  { %3226 = vtanh.f32 %v1194_v35 }
 0x35e   :  { %v3225_v50 = vpop.eup %3224 }
 0x35f   :  { %v1199_v17 = vmul.f32 %v3225_v50, %v1197_v27 }
 0x360   :  { %v3227_v28 = vpop.eup %3226 }
 0x361   :  { %v1200_v19 = vmul.f32 %v3227_v28, %v1198_v51  ;;  %v4110_v9 = vadd.f32 %v1201_v63, %v1199_v17  ;;  %v1213_v63 = vunpack.c.l.bf16 %v3980_v21 }
 0x363   :  { %v4112_v40 = vadd.f32 %v1202_v29, %v1200_v19 }
 0x365   :  { %v1217_v42 = vpack.c.bf16 %v4112_v40, %v4110_v9 }
 0x367   :  { %1251 = vmatmul.mubr.bf16.vlgmr.msra.gmra.mrb[40].mxu0 %v1217_v42  ;;  %2930 = vmatmul.mubr.bf16.vlgmr.msra.gmra.mrb[40].mxu1 %v1217_v42  ;;  %v1216_v42 = vunpack.c.h.bf16 %v3980_v21 }
 0x368   :  { %1358 = vmatpush1.bf16.msra.mxu0 %v3743_v55  ;;  %2934 = vmatpush3.bf16.msra.mxu1 %v3738_v52  ;;  %v1211_v52 = vunpack.c.l.bf16 %v3989_v1 }
 0x369   :  { %1359 = vmatprep.subr.bf16.mxu0 %v3749_v58  ;;  %2935 = vmatprep.subr.bf16.mxu1 %v4549_v62 }
 0x36a   :  { %1389 = vmatprep.mubr.bf16.mxu0 %v4550_v16  ;;  %2949 = vmatprep.mubr.msk.bf16.mxu1 %vm3502_vm1, %v4549_v62 }
 0x36c   :  { %1360 = vmatpush1.bf16.msra.mxu0 %v3761_v3  ;;  %2936 = vmatpush3.bf16.msra.mxu1 %v3754_v0  ;;  %v1212_v0 = vunpack.c.l.bf16 %v3992_v12 }
 0x36d   :  { %1361 = vmatprep.subr.bf16.mxu0 %v3769_v5  ;;  %2937 = vmatprep.subr.bf16.mxu1 %v4549_v62 }
 0x370   :  { %1362 = vmatpush1.bf16.msra.mxu0 %v3778_v10  ;;  %2938 = vmatpush3.bf16.msra.mxu1 %v3781_v11  ;;  %v1214_v11 = vunpack.c.h.bf16 %v3989_v1 }
 0x371   :  { %1363 = vmatprep.subr.bf16.mxu0 %v3788_v14  ;;  %2939 = vmatprep.subr.bf16.mxu1 %v4549_v62 }
 0x374   :  { %1364 = vmatpush1.bf16.msra.mxu0 %v3799_v22  ;;  %2940 = vmatpush3.bf16.msra.mxu1 %v3802_v23 }
 0x375   :  { %1365 = vmatprep.subr.bf16.mxu0 %v3808_v25  ;;  %2941 = vmatprep.subr.bf16.mxu1 %v4549_v62 }
 0x378   :  { %1366 = vmatpush1.bf16.msra.mxu0 %v3817_v30  ;;  %2942 = vmatpush3.bf16.msra.mxu1 %v3820_v31 }
 0x379   :  { %1367 = vmatprep.subr.bf16.mxu0 %v3827_v34  ;;  %2943 = vmatprep.subr.bf16.mxu1 %v4549_v62 }
 0x37c   :  { %1368 = vmatpush1.bf16.msra.mxu0 %v3839_v46  ;;  %2944 = vmatpush3.bf16.msra.mxu1 %v3842_v47 }
 0x37d   :  { %1369 = vmatprep.subr.bf16.mxu0 %v3848_v49  ;;  %2945 = vmatprep.subr.bf16.mxu1 %v4549_v62 }
 0x380   :  { %1370 = vmatpush1.bf16.msra.mxu0 %v3857_v53  ;;  %2946 = vmatpush3.bf16.msra.mxu1 %v3867_v56 }
 0x381   :  { %1371 = vmatprep.subr.bf16.mxu0 %v3864_v54  ;;  %2947 = vmatprep.subr.bf16.mxu1 %v4549_v62 }
 0x384   :  { %1372 = vmatpush1.bf16.msra.mxu0 %v3876_v57  ;;  %2948 = vmatpush3.bf16.msra.mxu1 %v3881_v59 }
 0x385   :  { %1496 = vmatprep.subr.bf16.mxu0 %v3725_v36  ;;  %2953 = vmatprep.subr.bf16.mxu1 %v4549_v62 }
 0x43a   :  { %v1252_v55 = vpop.f32.mrb[40].mxu0  ;;  %v1323_v58 = vpop.f32.mrb[40].mxu1 }
 0x43b   :  { %v1261_v3 = vadd.f32 %v1252_v55, %v1211_v52  ;;  %v1254_v5 = vpop.f32.mrb[41].mxu0  ;;  %v2931_v10 = vpop.f32.mrb[41].mxu1  ;;  %v1324_v50 = vadd.f32 %v4053_v33, %v1323_v58 }
 0x43c   :  { %v1275_v14 = vadd.f32 %v1254_v5, %v1212_v0  ;;  %v1256_v24 = vpop.f32.mrb[42].mxu0  ;;  %v1326_v48 = vpop.f32.mrb[42].mxu1 }
 0x43d   :  { %v2618_v2 = vmul.f32 -1.442695, %v1261_v3  ;;  %v1262_v36 = vadd.f32 %v1256_v24, %v1214_v11  ;;  %v1258_v32 = vpop.f32.mrb[43].mxu0  ;;  %v2932_v7 = vpop.f32.mrb[43].mxu1  ;;  %v1327_v19 = vadd.f32 %v4053_v33, %v1326_v48 }
 0x43e   :  { %v1276_v6 = vadd.f32 %v1258_v32, %v1215_v38  ;;  %v2620_v39 = vmul.f32 -1.442695, %v1275_v14  ;;  %v4170_v7 = vld [vmem:[%s4517_s3] ss:$8 sps:$4 sm:$0xff]  }
 0x43f   :  { %3228 = vpow2.f32 %v2618_v2  ;;  %v2619_v4 = vmul.f32 -1.442695, %v1262_v36 }
 0x440   :  { %v2621_v45 = vmul.f32 -1.442695, %v1276_v6  ;;  %v4189_v6 = vld [vmem:[%s4517_s3 + $0x10] ss:$8 sps:$4 sm:$0xff]  }
 0x441   :  { %3230 = vpow2.f32 %v2619_v4  ;;  %v4192_v4 = vld [vmem:[#allocation6 + $0x8] sm:$0xff]  }
 0x442   :  { %3232 = vpow2.f32 %v2620_v39  ;;  %v4198_v39 = vld [vmem:[%s4517_s3 + $0x24] ss:$8 sps:$4 sm:$0xff]  }
 0x443   :  { %3234 = vpow2.f32 %v2621_v45  ;;  %v4205_v45 = vld [vmem:[%s4517_s3 + $0x20] ss:$8 sps:$4 sm:$0xff]  }
 0x449   :  { %v3229_v44 = vpop.eup %3228 }
 0x44a   :  { %v1269_v35 = vadd.f32 1.0, %v3229_v44  ;;  %v4208_v44 = vld [vmem:[#allocation6 + $0x10] sm:$0xff]  }
 0x44b   :  { %v3231_v1 = vpop.eup %3230 }
 0x44c   :  { %3236 = vrcp.f32 %v1269_v35  ;;  %v1270_v61 = vadd.f32 1.0, %v3231_v1  ;;  %v3233_v41 = vpop.eup %3232  ;;  %v4214_v35 = vld [vmem:[%s4517_s3 + $0x34] ss:$8 sps:$4 sm:$0xff]  }
 0x44d   :  { %v3235_v12 = vpop.eup %3234  ;;  %v1283_v27 = vadd.f32 1.0, %v3233_v41 }
 0x44e   :  { %3238 = vrcp.f32 %v1270_v61  ;;  %v1284_v51 = vadd.f32 1.0, %v3235_v12 }
 0x44f   :  { %3240 = vrcp.f32 %v1283_v27 }
 0x450   :  { %3242 = vrcp.f32 %v1284_v51 }
 0x456   :  { %v3237_v17 = vpop.eup %3236 }
 0x457   :  { %v1330_v28 = vmul.f32 %v3237_v17, %v1324_v50 }
 0x458   :  { %v3239_v29 = vpop.eup %3238 }
 0x459   :  { %v1332_v52 = vadd.f32 %v1330_v28, %v1213_v63  ;;  %v1331_v55 = vmul.f32 %v3239_v29, %v1327_v19  ;;  %v3241_v3 = vpop.eup %3240 }
 0x45a   :  { %v3243_v5 = vpop.eup %3242  ;;  %v1336_v58 = vsub.f32 1.0, %v3241_v3  ;;  %v1340_v24 = vmul.f32 %v3241_v3, %v4110_v9  ;;  %v4173_v9 = vld [vmem:[#allocation6] sm:$0xff]  }
 0x45b   :  { %3244 = vtanh.f32 %v1332_v52  ;;  %v1333_v0 = vadd.f32 %v1331_v55, %v1216_v42  ;;  %v1337_v11 = vsub.f32 1.0, %v3243_v5  ;;  %v1341_v48 = vmul.f32 %v3243_v5, %v4112_v40  ;;  %v4179_v40 = vld [vmem:[%s4517_s3 + $0x14] ss:$8 sps:$4 sm:$0xff]  }
 0x45d   :  { %3246 = vtanh.f32 %v1333_v0  ;;  %v1352_v0 = vunpack.c.l.bf16 %v3978_v20 }
 0x465   :  { %v3245_v10 = vpop.eup %3244 }
 0x466   :  { %v1338_v14 = vmul.f32 %v3245_v10, %v1336_v58  ;;  %v1355_v10 = vunpack.c.h.bf16 %v3978_v20 }
 0x467   :  { %v3247_v38 = vpop.eup %3246 }
 0x468   :  { %v1339_v2 = vmul.f32 %v3247_v38, %v1337_v11  ;;  %v4161_v36 = vadd.f32 %v1340_v24, %v1338_v14 }
 0x46a   :  { %v4163_v21 = vadd.f32 %v1341_v48, %v1339_v2 }
 0x46c   :  { %v1356_v32 = vpack.c.bf16 %v4163_v21, %v4161_v36 }
 0x46e   :  { %1390 = vmatmul.mubr.bf16.vlgmr.msra.gmra.mrb[44].mxu0 %v1356_v32  ;;  %2950 = vmatmul.mubr.bf16.vlgmr.msra.gmra.mrb[44].mxu1 %v1356_v32 }
 0x46f   :  { %1497 = vmatpush1.bf16.msra.mxu0 %v4170_v7  ;;  %2954 = vmatpush3.bf16.msra.mxu1 %v4173_v9 }
 0x470   :  { %1498 = vmatprep.subr.bf16.mxu0 %v4179_v40  ;;  %2955 = vmatprep.subr.bf16.mxu1 %v4549_v62 }
 0x471   :  { %1528 = vmatprep.mubr.bf16.mxu0 %v4550_v16  ;;  %2969 = vmatprep.mubr.msk.bf16.mxu1 %vm3502_vm1, %v4549_v62 }
 0x473   :  { %1499 = vmatpush1.bf16.msra.mxu0 %v4189_v6  ;;  %2956 = vmatpush3.bf16.msra.mxu1 %v4192_v4 }
 0x474   :  { %1500 = vmatprep.subr.bf16.mxu0 %v4198_v39  ;;  %2957 = vmatprep.subr.bf16.mxu1 %v4549_v62 }
 0x477   :  { %1501 = vmatpush1.bf16.msra.mxu0 %v4205_v45  ;;  %2958 = vmatpush3.bf16.msra.mxu1 %v4208_v44 }
 0x478   :  { %1502 = vmatprep.subr.bf16.mxu0 %v4214_v35  ;;  %2959 = vmatprep.subr.bf16.mxu1 %v4549_v62 }
 0x47b   :  { %1503 = vmatpush1.bf16.msra.mxu0 %v3799_v22  ;;  %2960 = vmatpush3.bf16.msra.mxu1 %v3802_v23  ;;  %v4239_v22 = vld [vmem:[%s4517_s3 + $0x4] ss:$8 sps:$4 sm:$0xff]   ;;  %v1350_v23 = vunpack.c.l.bf16 %v4005_v60 }
 0x47c   :  { %1504 = vmatprep.subr.bf16.mxu0 %v3808_v25  ;;  %2961 = vmatprep.subr.bf16.mxu1 %v4549_v62 }
 0x47f   :  { %1505 = vmatpush1.bf16.msra.mxu0 %v3817_v30  ;;  %2962 = vmatpush3.bf16.msra.mxu1 %v3820_v31  ;;  %v1351_v31 = vunpack.c.l.bf16 %v4008_v8 }
 0x480   :  { %1506 = vmatprep.subr.bf16.mxu0 %v3827_v34  ;;  %2963 = vmatprep.subr.bf16.mxu1 %v4549_v62 }
 0x483   :  { %1507 = vmatpush1.bf16.msra.mxu0 %v3839_v46  ;;  %2964 = vmatpush3.bf16.msra.mxu1 %v3842_v47 }
 0x484   :  { %1508 = vmatprep.subr.bf16.mxu0 %v3848_v49  ;;  %2965 = vmatprep.subr.bf16.mxu1 %v4549_v62  ;;  %v1353_v49 = vunpack.c.h.bf16 %v4005_v60 }
 0x487   :  { %1509 = vmatpush1.bf16.msra.mxu0 %v3857_v53  ;;  %2966 = vmatpush3.bf16.msra.mxu1 %v3867_v56 }
 0x488   :  { %1510 = vmatprep.subr.bf16.mxu0 %v3864_v54  ;;  %2967 = vmatprep.subr.bf16.mxu1 %v4549_v62 }
 0x48b   :  { %1511 = vmatpush1.bf16.msra.mxu0 %v3876_v57  ;;  %2968 = vmatpush3.bf16.msra.mxu1 %v3881_v59  ;;  %v1354_v57 = vunpack.c.h.bf16 %v4008_v8 }
 0x48c   :  { %1635 = vmatprep.subr.bf16.mxu0 %v4239_v22  ;;  %2973 = vmatprep.subr.bf16.mxu1 %v4549_v62 }
 0x541   :  { %v1391_v25 = vpop.f32.mrb[44].mxu0  ;;  %v1462_v30 = vpop.f32.mrb[44].mxu1 }
 0x542   :  { %v1400_v34 = vadd.f32 %v1391_v25, %v1350_v23  ;;  %v1393_v46 = vpop.f32.mrb[45].mxu0  ;;  %v2951_v47 = vpop.f32.mrb[45].mxu1  ;;  %v1463_v42 = vadd.f32 %v4053_v33, %v1462_v30 }
 0x543   :  { %v1414_v53 = vadd.f32 %v1393_v46, %v1351_v31  ;;  %v1395_v54 = vpop.f32.mrb[46].mxu0  ;;  %v1465_v56 = vpop.f32.mrb[46].mxu1 }
 0x544   :  { %v2622_v59 = vmul.f32 -1.442695, %v1400_v34  ;;  %v1401_v1 = vadd.f32 %v1395_v54, %v1353_v49  ;;  %v1397_v61 = vpop.f32.mrb[47].mxu0  ;;  %v2952_v41 = vpop.f32.mrb[47].mxu1  ;;  %v1466_v5 = vadd.f32 %v4053_v33, %v1465_v56  ;;  %v4293_v54 = vld [vmem:[%s4517_s3 + $0x40] ss:$8 sps:$4 sm:$0xff]  }
 0x545   :  { %v1415_v12 = vadd.f32 %v1397_v61, %v1354_v57  ;;  %v2624_v50 = vmul.f32 -1.442695, %v1414_v53  ;;  %v4286_v53 = vld [vmem:[%s4517_s3 + $0x44] ss:$8 sps:$4 sm:$0xff]   ;;  %v4296_v56 = vld [vmem:[#allocation6 + $0x20] sm:$0xff]  }
 0x546   :  { %3248 = vpow2.f32 %v2622_v59  ;;  %v2623_v27 = vmul.f32 -1.442695, %v1401_v1  ;;  %v4302_v57 = vld [vmem:[%s4517_s3 + $0x54] ss:$8 sps:$4 sm:$0xff]   ;;  %v4309_v59 = vld [vmem:[%s4517_s3 + $0x50] ss:$8 sps:$4 sm:$0xff]  }
 0x547   :  { %v2625_v51 = vmul.f32 -1.442695, %v1415_v12  ;;  %v4312_v1 = vld [vmem:[#allocation6 + $0x28] sm:$0xff]   ;;  %v4328_v12 = vld [vmem:[#allocation6 + $0x30] sm:$0xff]  }
 0x548   :  { %3250 = vpow2.f32 %v2623_v27  ;;  %v4318_v61 = vld [vmem:[%s4517_s3 + $0x64] ss:$8 sps:$4 sm:$0xff]   ;;  %v4325_v41 = vld [vmem:[%s4517_s3 + $0x60] ss:$8 sps:$4 sm:$0xff]   ;;  %v4334_v27 = vld [vmem:[%s4517_s3 + $0x74] ss:$8 sps:$4 sm:$0xff]  }
 0x549   :  { %3252 = vpow2.f32 %v2624_v50  ;;  %v4341_v50 = vld [vmem:[%s4517_s3 + $0x70] ss:$8 sps:$4 sm:$0xff]  }
 0x54a   :  { %3254 = vpow2.f32 %v2625_v51  ;;  %v4344_v51 = vld [vmem:[#allocation6 + $0x38] sm:$0xff]  }
 0x550   :  { %v3249_v17 = vpop.eup %3248 }
 0x551   :  { %v1408_v63 = vadd.f32 1.0, %v3249_v17  ;;  %v1489_v17 = vunpack.c.l.bf16 %v4022_v37 }
 0x552   :  { %v3251_v60 = vpop.eup %3250 }
 0x553   :  { %3256 = vrcp.f32 %v1408_v63  ;;  %v1409_v28 = vadd.f32 1.0, %v3251_v60  ;;  %v3253_v19 = vpop.eup %3252 }
 0x554   :  { %v3255_v8 = vpop.eup %3254  ;;  %v1422_v29 = vadd.f32 1.0, %v3253_v19 }
 0x555   :  { %3258 = vrcp.f32 %v1409_v28  ;;  %v1423_v52 = vadd.f32 1.0, %v3255_v8  ;;  %v1490_v28 = vunpack.c.l.bf16 %v4024_v43 }
 0x556   :  { %3260 = vrcp.f32 %v1422_v29 }
 0x557   :  { %3262 = vrcp.f32 %v1423_v52 }
 0x55d   :  { %v3257_v55 = vpop.eup %3256 }
 0x55e   :  { %v1469_v3 = vmul.f32 %v3257_v55, %v1463_v42  ;;  %v1492_v42 = vunpack.c.h.bf16 %v4022_v37 }
 0x55f   :  { %v3259_v58 = vpop.eup %3258 }
 0x560   :  { %v1471_v11 = vadd.f32 %v1469_v3, %v1352_v0  ;;  %v1470_v14 = vmul.f32 %v3259_v58, %v1466_v5  ;;  %v3261_v38 = vpop.eup %3260  ;;  %v1493_v3 = vunpack.c.h.bf16 %v4024_v43 }
 0x561   :  { %v3263_v2 = vpop.eup %3262  ;;  %v1475_v48 = vsub.f32 1.0, %v3261_v38  ;;  %v1479_v30 = vmul.f32 %v3261_v38, %v4161_v36  ;;  %v4277_v36 = vld [vmem:[%s4517_s3 + $0x30] ss:$8 sps:$4 sm:$0xff]  }
 0x562   :  { %3264 = vtanh.f32 %v1471_v11  ;;  %v1472_v24 = vadd.f32 %v1470_v14, %v1355_v10  ;;  %v1476_v23 = vsub.f32 1.0, %v3263_v2  ;;  %v1480_v46 = vmul.f32 %v3263_v2, %v4163_v21  ;;  %v4280_v21 = vld [vmem:[#allocation6 + $0x18] sm:$0xff]  }
 0x564   :  { %3266 = vtanh.f32 %v1472_v24 }
 0x56c   :  { %v3265_v32 = vpop.eup %3264 }
 0x56d   :  { %v1477_v25 = vmul.f32 %v3265_v32, %v1475_v48 }
 0x56e   :  { %v3267_v31 = vpop.eup %3266 }
 0x56f   :  { %v1478_v34 = vmul.f32 %v3267_v31, %v1476_v23  ;;  %v4253_v47 = vadd.f32 %v1479_v30, %v1477_v25 }
 0x571   :  { %v4255_v20 = vadd.f32 %v1480_v46, %v1478_v34 }
 0x573   :  { %v1495_v49 = vpack.c.bf16 %v4255_v20, %v4253_v47 }
 0x575   :  { %1529 = vmatmul.mubr.bf16.vlgmr.msra.gmra.mrb[48].mxu0 %v1495_v49  ;;  %2970 = vmatmul.mubr.bf16.vlgmr.msra.gmra.mrb[48].mxu1 %v1495_v49  ;;  %v1491_v49 = vunpack.c.l.bf16 %v3996_v15 }
 0x576   :  { %1636 = vmatpush1.bf16.msra.mxu0 %v4170_v7  ;;  %2974 = vmatpush3.bf16.msra.mxu1 %v4173_v9 }
 0x577   :  { %1637 = vmatprep.subr.bf16.mxu0 %v4179_v40  ;;  %2975 = vmatprep.subr.bf16.mxu1 %v4549_v62 }
 0x578   :  { %1667 = vmatprep.mubr.bf16.mxu0 %v4550_v16  ;;  %2989 = vmatprep.mubr.msk.bf16.mxu1 %vm3502_vm1, %v4549_v62 }
 0x57a   :  { %1638 = vmatpush1.bf16.msra.mxu0 %v4189_v6  ;;  %2976 = vmatpush3.bf16.msra.mxu1 %v4192_v4 }
 0x57b   :  { %1639 = vmatprep.subr.bf16.mxu0 %v4198_v39  ;;  %2977 = vmatprep.subr.bf16.mxu1 %v4549_v62 }
 0x57e   :  { %1640 = vmatpush1.bf16.msra.mxu0 %v4205_v45  ;;  %2978 = vmatpush3.bf16.msra.mxu1 %v4208_v44 }
 0x57f   :  { %1641 = vmatprep.subr.bf16.mxu0 %v4214_v35  ;;  %2979 = vmatprep.subr.bf16.mxu1 %v4549_v62 }
 0x582   :  { %1642 = vmatpush1.bf16.msra.mxu0 %v4277_v36  ;;  %2980 = vmatpush3.bf16.msra.mxu1 %v4280_v21 }
 0x583   :  { %1643 = vmatprep.subr.bf16.mxu0 %v4286_v53  ;;  %2981 = vmatprep.subr.bf16.mxu1 %v4549_v62 }
 0x586   :  { %1644 = vmatpush1.bf16.msra.mxu0 %v4293_v54  ;;  %2982 = vmatpush3.bf16.msra.mxu1 %v4296_v56 }
 0x587   :  { %1645 = vmatprep.subr.bf16.mxu0 %v4302_v57  ;;  %2983 = vmatprep.subr.bf16.mxu1 %v4549_v62 }
 0x58a   :  { %1646 = vmatpush1.bf16.msra.mxu0 %v4309_v59  ;;  %2984 = vmatpush3.bf16.msra.mxu1 %v4312_v1 }
 0x58b   :  { %1647 = vmatprep.subr.bf16.mxu0 %v4318_v61  ;;  %2985 = vmatprep.subr.bf16.mxu1 %v4549_v62 }
 0x58e   :  { %1648 = vmatpush1.bf16.msra.mxu0 %v4325_v41  ;;  %2986 = vmatpush3.bf16.msra.mxu1 %v4328_v12 }
 0x58f   :  { %1649 = vmatprep.subr.bf16.mxu0 %v4334_v27  ;;  %2987 = vmatprep.subr.bf16.mxu1 %v4549_v62 }
 0x592   :  { %1650 = vmatpush1.bf16.msra.mxu0 %v4341_v50  ;;  %2988 = vmatpush3.bf16.msra.mxu1 %v4344_v51 }
 0x593   :  { %1774 = vmatprep.subr.bf16.mxu0 %v4239_v22  ;;  %2993 = vmatprep.subr.bf16.mxu1 %v4549_v62 }
 0x648   :  { %v1530_v63 = vpop.f32.mrb[48].mxu0  ;;  %v1601_v60 = vpop.f32.mrb[48].mxu1 }
 0x649   :  { %v1539_v19 = vadd.f32 %v1530_v63, %v1489_v17  ;;  %v1532_v8 = vpop.f32.mrb[49].mxu0  ;;  %v2971_v29 = vpop.f32.mrb[49].mxu1  ;;  %v1602_v31 = vadd.f32 %v4053_v33, %v1601_v60 }
 0x64a   :  { %v1553_v52 = vadd.f32 %v1532_v8, %v1490_v28  ;;  %v1534_v55 = vpop.f32.mrb[50].mxu0  ;;  %v1604_v0 = vpop.f32.mrb[50].mxu1 }
 0x64b   :  { %v2626_v5 = vmul.f32 -1.442695, %v1539_v19  ;;  %v1540_v58 = vadd.f32 %v1534_v55, %v1492_v42  ;;  %v1536_v10 = vpop.f32.mrb[51].mxu0  ;;  %v2972_v11 = vpop.f32.mrb[51].mxu1  ;;  %v1605_v63 = vadd.f32 %v4053_v33, %v1604_v0  ;;  %v1494_v19 = vunpack.c.h.bf16 %v3996_v15 }
 0x64c   :  { %v1554_v14 = vadd.f32 %v1536_v10, %v1493_v3  ;;  %v2628_v38 = vmul.f32 -1.442695, %v1553_v52 }
 0x64d   :  { %3268 = vpow2.f32 %v2626_v5  ;;  %v2627_v24 = vmul.f32 -1.442695, %v1540_v58 }
 0x64e   :  { %v2629_v2 = vmul.f32 -1.442695, %v1554_v14 }
 0x64f   :  { %3270 = vpow2.f32 %v2627_v24 }
 0x650   :  { %3272 = vpow2.f32 %v2628_v38 }
 0x651   :  { %3274 = vpow2.f32 %v2629_v2 }
 0x657   :  { %v3269_v48 = vpop.eup %3268 }
 0x658   :  { %v1547_v32 = vadd.f32 1.0, %v3269_v48  ;;  %v1629_v48 = vunpack.c.l.bf16 %v4032_v18 }
 0x659   :  { %v3271_v37 = vpop.eup %3270 }
 0x65a   :  { %3276 = vrcp.f32 %v1547_v32  ;;  %v1548_v23 = vadd.f32 1.0, %v3271_v37  ;;  %v3273_v25 = vpop.eup %3272 }
 0x65b   :  { %v3275_v43 = vpop.eup %3274  ;;  %v1561_v30 = vadd.f32 1.0, %v3273_v25  ;;  %v1631_v25 = vunpack.c.h.bf16 %v4030_v26 }
 0x65c   :  { %3278 = vrcp.f32 %v1548_v23  ;;  %v1562_v34 = vadd.f32 1.0, %v3275_v43 }
 0x65d   :  { %3280 = vrcp.f32 %v1561_v30 }
 0x65e   :  { %3282 = vrcp.f32 %v1562_v34  ;;  %v1632_v34 = vunpack.c.h.bf16 %v4032_v18 }
 0x664   :  { %v3277_v46 = vpop.eup %3276 }
 0x665   :  { %v1608_v17 = vmul.f32 %v3277_v46, %v1602_v31 }
 0x666   :  { %v3279_v28 = vpop.eup %3278 }
 0x667   :  { %v1610_v8 = vadd.f32 %v1608_v17, %v1491_v49  ;;  %v1609_v29 = vmul.f32 %v3279_v28, %v1605_v63  ;;  %v3281_v52 = vpop.eup %3280 }
 0x668   :  { %v3283_v55 = vpop.eup %3282  ;;  %v1614_v60 = vsub.f32 1.0, %v3281_v52  ;;  %v1618_v10 = vmul.f32 %v3281_v52, %v4253_v47  ;;  %v1628_v47 = vunpack.c.l.bf16 %v4030_v26 }
 0x669   :  { %3284 = vtanh.f32 %v1610_v8  ;;  %v1611_v42 = vadd.f32 %v1609_v29, %v1494_v19  ;;  %v1615_v5 = vsub.f32 1.0, %v3283_v55  ;;  %v1619_v0 = vmul.f32 %v3283_v55, %v4255_v20 }
 0x66b   :  { %3286 = vtanh.f32 %v1611_v42 }
 0x673   :  { %v3285_v3 = vpop.eup %3284 }
 0x674   :  { %v1616_v58 = vmul.f32 %v3285_v3, %v1614_v60 }
 0x675   :  { %v3287_v11 = vpop.eup %3286 }
 0x676   :  { %v1617_v14 = vmul.f32 %v3287_v11, %v1615_v5  ;;  %v4359_v24 = vadd.f32 %v1618_v10, %v1616_v58  ;;  %v1630_v10 = vunpack.c.l.bf16 %v3994_v13 }
 0x678   :  { %v4361_v15 = vadd.f32 %v1619_v0, %v1617_v14 }
 0x67a   :  { %v1634_v38 = vpack.c.bf16 %v4361_v15, %v4359_v24 }
 0x67c   :  { %1668 = vmatmul.mubr.bf16.vlgmr.msra.gmra.mrb[52].mxu0 %v1634_v38  ;;  %2990 = vmatmul.mubr.bf16.vlgmr.msra.gmra.mrb[52].mxu1 %v1634_v38  ;;  %v1633_v38 = vunpack.c.h.bf16 %v3994_v13 }
 0x67d   :  { %1775 = vmatpush1.bf16.msra.mxu0 %v4170_v7  ;;  %2994 = vmatpush3.bf16.msra.mxu1 %v4173_v9 }
 0x67e   :  { %1776 = vmatprep.subr.bf16.mxu0 %v4179_v40  ;;  %2995 = vmatprep.subr.bf16.mxu1 %v4549_v62 }
 0x67f   :  { %1806 = vmatprep.mubr.bf16.mxu0 %v4550_v16  ;;  %3009 = vmatprep.mubr.msk.bf16.mxu1 %vm3502_vm1, %v4549_v62 }
 0x681   :  { %1777 = vmatpush1.bf16.msra.mxu0 %v4189_v6  ;;  %2996 = vmatpush3.bf16.msra.mxu1 %v4192_v4 }
 0x682   :  { %1778 = vmatprep.subr.bf16.mxu0 %v4198_v39  ;;  %2997 = vmatprep.subr.bf16.mxu1 %v4549_v62 }
 0x685   :  { %1779 = vmatpush1.bf16.msra.mxu0 %v4205_v45  ;;  %2998 = vmatpush3.bf16.msra.mxu1 %v4208_v44 }
 0x686   :  { %1780 = vmatprep.subr.bf16.mxu0 %v4214_v35  ;;  %2999 = vmatprep.subr.bf16.mxu1 %v4549_v62 }
 0x689   :  { %1781 = vmatpush1.bf16.msra.mxu0 %v4277_v36  ;;  %3000 = vmatpush3.bf16.msra.mxu1 %v4280_v21 }
 0x68a   :  { %1782 = vmatprep.subr.bf16.mxu0 %v4286_v53  ;;  %3001 = vmatprep.subr.bf16.mxu1 %v4549_v62 }
 0x68d   :  { %1783 = vmatpush1.bf16.msra.mxu0 %v4293_v54  ;;  %3002 = vmatpush3.bf16.msra.mxu1 %v4296_v56 }
 0x68e   :  { %1784 = vmatprep.subr.bf16.mxu0 %v4302_v57  ;;  %3003 = vmatprep.subr.bf16.mxu1 %v4549_v62 }
 0x691   :  { %1785 = vmatpush1.bf16.msra.mxu0 %v4309_v59  ;;  %3004 = vmatpush3.bf16.msra.mxu1 %v4312_v1 }
 0x692   :  { %1786 = vmatprep.subr.bf16.mxu0 %v4318_v61  ;;  %3005 = vmatprep.subr.bf16.mxu1 %v4549_v62 }
 0x695   :  { %1787 = vmatpush1.bf16.msra.mxu0 %v4325_v41  ;;  %3006 = vmatpush3.bf16.msra.mxu1 %v4328_v12 }
 0x696   :  { %1788 = vmatprep.subr.bf16.mxu0 %v4334_v27  ;;  %3007 = vmatprep.subr.bf16.mxu1 %v4549_v62 }
 0x699   :  { %1789 = vmatpush1.bf16.msra.mxu0 %v4341_v50  ;;  %3008 = vmatpush3.bf16.msra.mxu1 %v4344_v51 }
 0x69a   :  { %1913 = vmatprep.subr.bf16.mxu0 %v4239_v22  ;;  %3013 = vmatprep.subr.bf16.mxu1 %v4549_v62 }
 0x74f   :  { %v1669_v20 = vpop.f32.mrb[52].mxu0  ;;  %v1740_v2 = vpop.f32.mrb[52].mxu1 }
 0x750   :  { %v1678_v32 = vadd.f32 %v1669_v20, %v1628_v47  ;;  %v1671_v37 = vpop.f32.mrb[53].mxu0  ;;  %v2991_v23 = vpop.f32.mrb[53].mxu1  ;;  %v1741_v3 = vadd.f32 %v4053_v33, %v1740_v2 }
 0x751   :  { %v1692_v43 = vadd.f32 %v1671_v37, %v1629_v48  ;;  %v1673_v30 = vpop.f32.mrb[54].mxu0  ;;  %v1743_v31 = vpop.f32.mrb[54].mxu1 }
 0x752   :  { %v2630_v46 = vmul.f32 -1.442695, %v1678_v32  ;;  %v1679_v22 = vadd.f32 %v1673_v30, %v1631_v25  ;;  %v1675_v49 = vpop.f32.mrb[55].mxu0  ;;  %v2992_v17 = vpop.f32.mrb[55].mxu1  ;;  %v1744_v14 = vadd.f32 %v4053_v33, %v1743_v31 }
 0x753   :  { %v1693_v63 = vadd.f32 %v1675_v49, %v1632_v34  ;;  %v2632_v19 = vmul.f32 -1.442695, %v1692_v43 }
 0x754   :  { %3288 = vpow2.f32 %v2630_v46  ;;  %v2631_v28 = vmul.f32 -1.442695, %v1679_v22 }
 0x755   :  { %v2633_v8 = vmul.f32 -1.442695, %v1693_v63 }
 0x756   :  { %3290 = vpow2.f32 %v2631_v28 }
 0x757   :  { %3292 = vpow2.f32 %v2632_v19 }
 0x758   :  { %3294 = vpow2.f32 %v2633_v8  ;;  %v4457_v8 = vld [vmem:[%s4522_s8 + $0x1] ss:$0 sm:$0xff] }
 0x75e   :  { %v3289_v29 = vpop.eup %3288 }
 0x75f   :  { %v1686_v42 = vadd.f32 1.0, %v3289_v29 }
 0x760   :  { %v3291_v26 = vpop.eup %3290 }
 0x761   :  { %3296 = vrcp.f32 %v1686_v42  ;;  %v1687_v52 = vadd.f32 1.0, %v3291_v26  ;;  %v3293_v55 = vpop.eup %3292 }
 0x762   :  { %v3295_v18 = vpop.eup %3294  ;;  %v1700_v60 = vadd.f32 1.0, %v3293_v55 }
 0x763   :  { %3298 = vrcp.f32 %v1687_v52  ;;  %v1701_v5 = vadd.f32 1.0, %v3295_v18  ;;  %v4553_v52 = vld [vmem:[#allocation17_spill] sm:$0xff] }
 0x764   :  { %3300 = vrcp.f32 %v1700_v60  ;;  %v1769_v55 = vunpack.c.l.bf16 %v4553_v52 }
 0x765   :  { %3302 = vrcp.f32 %v1701_v5  ;;  %v1772_v5 = vunpack.c.h.bf16 %v4553_v52 }
 0x76b   :  { %v3297_v58 = vpop.eup %3296 }
 0x76c   :  { %v1747_v11 = vmul.f32 %v3297_v58, %v1741_v3 }
 0x76d   :  { %v3299_v0 = vpop.eup %3298 }
 0x76e   :  { %v1749_v47 = vadd.f32 %v1747_v11, %v1630_v10  ;;  %v1748_v20 = vmul.f32 %v3299_v0, %v1744_v14  ;;  %v3301_v32 = vpop.eup %3300 }
 0x76f   :  { %v3303_v37 = vpop.eup %3302  ;;  %v1753_v2 = vsub.f32 1.0, %v3301_v32  ;;  %v1757_v30 = vmul.f32 %v3301_v32, %v4359_v24 }
 0x770   :  { %3304 = vtanh.f32 %v1749_v47  ;;  %v1750_v48 = vadd.f32 %v1748_v20, %v1633_v38  ;;  %v1754_v25 = vsub.f32 1.0, %v3303_v37  ;;  %v1758_v33 = vmul.f32 %v3303_v37, %v4361_v15 }
 0x772   :  { %3306 = vtanh.f32 %v1750_v48 }
 0x77a   :  { %v3305_v23 = vpop.eup %3304 }
 0x77b   :  { %v1755_v43 = vmul.f32 %v3305_v23, %v1753_v2 }
 0x77c   :  { %v3307_v34 = vpop.eup %3306 }
 0x77d   :  { %v1756_v46 = vmul.f32 %v3307_v34, %v1754_v25  ;;  %v4410_v31 = vadd.f32 %v1757_v30, %v1755_v43  ;;  %v3140_v30 = vld [vmem:[#allocation8] ss:$12 sps:$4 sm:$0xff]   ;;  %v3143_v34 = vld [vmem:[#allocation8 + $0x8] ss:$12 sps:$4 sm:$0xff]  }
 0x77f   :  { %v4412_v13 = vadd.f32 %v1758_v33, %v1756_v46  ;;  %v3146_v33 = vld [vmem:[#allocation8 + $0x1c] ss:$12 sps:$4 sm:$0xff]  }
 0x781   :  { %v1773_v22 = vpack.c.bf16 %v4412_v13, %v4410_v31 }
 0x783   :  { %1807 = vmatmul.mubr.bf16.vlgmr.msra.gmra.mrb[56].mxu0 %v1773_v22  ;;  %3010 = vmatmul.mubr.bf16.vlgmr.msra.gmra.mrb[56].mxu1 %v1773_v22  ;;  %v3144_v22 = vld [vmem:[#allocation8 + $0x18] ss:$12 sps:$4 sm:$0xff]  }
 0x784   :  { %1914 = vmatpush1.bf16.msra.mxu0 %v4170_v7  ;;  %3014 = vmatpush3.bf16.msra.mxu1 %v4173_v9  ;;  %v3142_v7 = vld [vmem:[#allocation8 + $0x4] ss:$12 sps:$4 sm:$0xff]  }
 0x785   :  { %1915 = vmatprep.subr.bf16.mxu0 %v4179_v40  ;;  %3015 = vmatprep.subr.bf16.mxu1 %v4549_v62  ;;  %v4551_v9 = vld [vmem:[#allocation18_spill] sm:$0xff] }
 0x786   :  { %1945 = vmatprep.mubr.bf16.mxu0 %v4550_v16  ;;  %3029 = vmatprep.mubr.msk.bf16.mxu1 %vm3502_vm1, %v4549_v62  ;;  %v1767_v40 = vunpack.c.l.bf16 %v4551_v9 }
 0x788   :  { %1916 = vmatpush1.bf16.msra.mxu0 %v4189_v6  ;;  %3016 = vmatpush3.bf16.msra.mxu1 %v4192_v4 }
 0x789   :  { %1917 = vmatprep.subr.bf16.mxu0 %v4198_v39  ;;  %3017 = vmatprep.subr.bf16.mxu1 %v4549_v62  ;;  %v4552_v39 = vld [vmem:[#allocation19_spill] sm:$0xff] }
 0x78c   :  { %1918 = vmatpush1.bf16.msra.mxu0 %v4205_v45  ;;  %3018 = vmatpush3.bf16.msra.mxu1 %v4208_v44  ;;  %v1768_v45 = vunpack.c.l.bf16 %v4552_v39 }
 0x78d   :  { %1919 = vmatprep.subr.bf16.mxu0 %v4214_v35  ;;  %3019 = vmatprep.subr.bf16.mxu1 %v4549_v62 }
 0x790   :  { %1920 = vmatpush1.bf16.msra.mxu0 %v4277_v36  ;;  %3020 = vmatpush3.bf16.msra.mxu1 %v4280_v21  ;;  %v1770_v21 = vunpack.c.h.bf16 %v4551_v9  ;;  %v3151_v9 = vld [vmem:[#allocation8 + $0x38] ss:$12 sps:$4 sm:$0xff]  }
 0x791   :  { %1921 = vmatprep.subr.bf16.mxu0 %v4286_v53  ;;  %3021 = vmatprep.subr.bf16.mxu1 %v4549_v62 }
 0x794   :  { %1922 = vmatpush1.bf16.msra.mxu0 %v4293_v54  ;;  %3022 = vmatpush3.bf16.msra.mxu1 %v4296_v56 }
 0x795   :  { %1923 = vmatprep.subr.bf16.mxu0 %v4302_v57  ;;  %3023 = vmatprep.subr.bf16.mxu1 %v4549_v62  ;;  %v1771_v57 = vunpack.c.h.bf16 %v4552_v39  ;;  %v3158_v39 = vld [vmem:[#allocation8 + $0x64] ss:$12 sps:$4 sm:$0xff]  }
 0x798   :  { %1924 = vmatpush1.bf16.msra.mxu0 %v4309_v59  ;;  %3024 = vmatpush3.bf16.msra.mxu1 %v4312_v1 }
 0x799   :  { %1925 = vmatprep.subr.bf16.mxu0 %v4318_v61  ;;  %3025 = vmatprep.subr.bf16.mxu1 %v4549_v62 }
 0x79c   :  { %1926 = vmatpush1.bf16.msra.mxu0 %v4325_v41  ;;  %3026 = vmatpush3.bf16.msra.mxu1 %v4328_v12 }
 0x79d   :  { %1927 = vmatprep.subr.bf16.mxu0 %v4334_v27  ;;  %3027 = vmatprep.subr.bf16.mxu1 %v4549_v62 }
 0x7a0   :  { %1928 = vmatpush1.bf16.msra.mxu0 %v4341_v50  ;;  %3028 = vmatpush3.bf16.msra.mxu1 %v4344_v51 }
 0x7a1   :  { %3033 = vmatprep.subr.bf16.mxu1 %v4549_v62  ;;  %2224 = vmatprep.subr.bf16.mxu0 %v3142_v7  ;;  %v3148_v7 = vld [vmem:[#allocation8 + $0x30] ss:$12 sps:$4 sm:$0xff]  }
 0x856   :  { %v1808_v6 = vpop.f32.mrb[56].mxu0  ;;  %v1879_v4 = vpop.f32.mrb[56].mxu1 }
 0x857   :  { %v1817_v44 = vadd.f32 %v1808_v6, %v1767_v40  ;;  %v1810_v35 = vpop.f32.mrb[57].mxu0  ;;  %v3011_v36 = vpop.f32.mrb[57].mxu1  ;;  %v1880_v29 = vadd.f32 %v4457_v8, %v1879_v4  ;;  %v3154_v40 = vld [vmem:[#allocation8 + $0x4c] ss:$12 sps:$4 sm:$0xff]   ;;  %v3152_v6 = vld [vmem:[#allocation8 + $0x48] ss:$12 sps:$4 sm:$0xff]  }
 0x858   :  { %v1831_v53 = vadd.f32 %v1810_v35, %v1768_v45  ;;  %v1812_v54 = vpop.f32.mrb[58].mxu0  ;;  %v1882_v56 = vpop.f32.mrb[58].mxu1  ;;  %v3155_v4 = vld [vmem:[#allocation8 + $0x50] ss:$12 sps:$4 sm:$0xff]   ;;  %v3159_v45 = vld [vmem:[#allocation8 + $0x68] ss:$12 sps:$4 sm:$0xff]  }
 0x859   :  { %v2634_v59 = vmul.f32 -1.442695, %v1817_v44  ;;  %v1818_v1 = vadd.f32 %v1812_v54, %v1770_v21  ;;  %v1814_v61 = vpop.f32.mrb[59].mxu0  ;;  %v3012_v41 = vpop.f32.mrb[59].mxu1  ;;  %v1883_v60 = vadd.f32 %v4457_v8, %v1882_v56  ;;  %v3162_v44 = vld [vmem:[#allocation8 + $0x7c] ss:$12 sps:$4 sm:$0xff]  }
 0x85a   :  { %v1832_v12 = vadd.f32 %v1814_v61, %v1771_v57  ;;  %v2636_v50 = vmul.f32 -1.442695, %v1831_v53  ;;  %v3160_v35 = vld [vmem:[#allocation8 + $0x78] ss:$12 sps:$4 sm:$0xff]   ;;  %v3163_v36 = vld [vmem:[#allocation8 + $0x80] ss:$12 sps:$4 sm:$0xff]  }
 0x85b   :  { %3308 = vpow2.f32 %v2634_v59  ;;  %v2635_v27 = vmul.f32 -1.442695, %v1818_v1  ;;  %v3166_v21 = vld [vmem:[#allocation8 + $0x94] ss:$12 sps:$4 sm:$0xff]   ;;  %v3164_v53 = vld [vmem:[#allocation8 + $0x90] ss:$12 sps:$4 sm:$0xff]  }
 0x85c   :  { %v2637_v51 = vmul.f32 -1.442695, %v1832_v12  ;;  %v3167_v54 = vld [vmem:[#allocation8 + $0x98] ss:$12 sps:$4 sm:$0xff]   ;;  %v3168_v57 = vld [vmem:[#allocation8 + $0xa8] ss:$12 sps:$4 sm:$0xff]  }
 0x85d   :  { %3310 = vpow2.f32 %v2635_v27  ;;  %v3170_v56 = vld [vmem:[#allocation8 + $0xac] ss:$12 sps:$4 sm:$0xff]   ;;  %v3171_v59 = vld [vmem:[#allocation8 + $0xb0] ss:$12 sps:$4 sm:$0xff]   ;;  %v4554_v1 = vld [vmem:[#allocation14_spill] sm:$0xff] }
 0x85e   :  { %3312 = vpow2.f32 %v2636_v50  ;;  %v3172_v61 = vld [vmem:[#allocation9 + $0x40] sm:$0xff]   ;;  %v3174_v12 = vld [vmem:[#allocation9 + $0x48] sm:$0xff]   ;;  %v3176_v50 = vld [vmem:[#allocation9 + $0x50] sm:$0xff]  }
 0x85f   :  { %3314 = vpow2.f32 %v2637_v51  ;;  %v3173_v41 = vld [vmem:[#allocation9] sm:$0xff]   ;;  %v3175_v27 = vld [vmem:[#allocation9 + $0x8] sm:$0xff]   ;;  %v3177_v51 = vld [vmem:[#allocation9 + $0x10] sm:$0xff]  }
 0x865   :  { %v3309_v24 = vpop.eup %3308 }
 0x866   :  { %v1825_v15 = vadd.f32 1.0, %v3309_v24  ;;  %v3178_v24 = vld [vmem:[#allocation9 + $0x58] sm:$0xff]  }
 0x867   :  { %v3311_v49 = vpop.eup %3310 }
 0x868   :  { %3316 = vrcp.f32 %v1825_v15  ;;  %v1826_v17 = vadd.f32 1.0, %v3311_v49  ;;  %v3313_v63 = vpop.eup %3312  ;;  %v3180_v15 = vld [vmem:[#allocation9 + $0x60] sm:$0xff]  }
 0x869   :  { %v3315_v28 = vpop.eup %3314  ;;  %v1839_v19 = vadd.f32 1.0, %v3313_v63  ;;  %v3181_v49 = vld [vmem:[#allocation9 + $0x20] sm:$0xff]   ;;  %v3183_v63 = vld [vmem:[#allocation9 + $0x28] sm:$0xff]  }
 0x86a   :  { %3318 = vrcp.f32 %v1826_v17  ;;  %v1840_v42 = vadd.f32 1.0, %v3315_v28  ;;  %v3182_v17 = vld [vmem:[#allocation9 + $0x68] sm:$0xff]   ;;  %v3184_v28 = vld [vmem:[#allocation9 + $0x70] sm:$0xff]  }
 0x86b   :  { %3320 = vrcp.f32 %v1839_v19  ;;  %v3185_v19 = vld [vmem:[#allocation9 + $0x30] sm:$0xff]  }
 0x86c   :  { %3322 = vrcp.f32 %v1840_v42  ;;  %v3187_v42 = vld [vmem:[#allocation9 + $0x38] sm:$0xff]  }
 0x872   :  { %v3317_v26 = vpop.eup %3316 }
 0x873   :  { %v1886_v18 = vmul.f32 %v3317_v26, %v1880_v29  ;;  %v3186_v29 = vld [vmem:[#allocation9 + $0x78] sm:$0xff]   ;;  %v4555_v26 = vld [vmem:[#allocation20_spill] sm:$0xff] }
 0x874   :  { %v3319_v3 = vpop.eup %3318  ;;  %v1906_v52 = vunpack.c.l.bf16 %v4555_v26 }
 0x875   :  { %v1888_v58 = vadd.f32 %v1886_v18, %v1769_v55  ;;  %v1887_v10 = vmul.f32 %v3319_v3, %v1883_v60  ;;  %v3321_v14 = vpop.eup %3320  ;;  %v4556_v60 = vld [vmem:[#allocation21_spill] sm:$0xff] }
 0x876   :  { %v3323_v0 = vpop.eup %3322  ;;  %v1892_v38 = vsub.f32 1.0, %v3321_v14  ;;  %v1896_v32 = vmul.f32 %v3321_v14, %v4410_v31  ;;  %v3147_v31 = vld [vmem:[#allocation8 + $0x20] ss:$12 sps:$4 sm:$0xff]   ;;  %v1907_v3 = vunpack.c.l.bf16 %v4556_v60 }
 0x877   :  { %3324 = vtanh.f32 %v1888_v58  ;;  %v1889_v11 = vadd.f32 %v1887_v10, %v1772_v5  ;;  %v1893_v20 = vsub.f32 1.0, %v3323_v0  ;;  %v1897_v23 = vmul.f32 %v3323_v0, %v4412_v13  ;;  %v3150_v13 = vld [vmem:[#allocation8 + $0x34] ss:$12 sps:$4 sm:$0xff]  }
 0x879   :  { %3326 = vtanh.f32 %v1889_v11  ;;  %v1909_v11 = vunpack.c.h.bf16 %v4555_v26 }
 0x881   :  { %v3325_v47 = vpop.eup %3324 }
 0x882   :  { %v1894_v48 = vmul.f32 %v3325_v47, %v1892_v38  ;;  %v1910_v47 = vunpack.c.h.bf16 %v4556_v60 }
 0x883   :  { %v3327_v37 = vpop.eup %3326 }
 0x884   :  { %v1895_v2 = vmul.f32 %v3327_v37, %v1893_v20  ;;  %v4465_v25 = vadd.f32 %v1896_v32, %v1894_v48 }
 0x886   :  { %v4467_v43 = vadd.f32 %v1897_v23, %v1895_v2 }
 0x888   :  { %v1912_v46 = vpack.c.bf16 %v4467_v43, %v4465_v25 }
 0x88a   :  { %1946 = vmatmul.mubr.bf16.vlgmr.msra.gmra.mrb[60].mxu0 %v1912_v46  ;;  %3030 = vmatmul.mubr.bf16.vlgmr.msra.gmra.mrb[60].mxu1 %v1912_v46 }
 0x88b   :  { %2225 = vmatpush1.bf16.msra.mxu0 %v3140_v30  ;;  %3034 = vmatpush3.bf16.msra.mxu1 %v3143_v34 }
 0x88c   :  { %2226 = vmatprep.subr.bf16.mxu0 %v3146_v33  ;;  %3035 = vmatprep.subr.bf16.mxu1 %v4549_v62 }
 0x88d   :  { %2256 = vmatprep.mubr.bf16.mxu0 %v4550_v16  ;;  %3049 = vmatprep.mubr.msk.bf16.mxu1 %vm3502_vm1, %v4549_v62  ;;  %v3156_v16 = vld [vmem:[#allocation8 + $0x60] ss:$12 sps:$4 sm:$0xff]  }
 0x88f   :  { %2227 = vmatpush1.bf16.msra.mxu0 %v3144_v22  ;;  %3036 = vmatpush3.bf16.msra.mxu1 %v3147_v31 }
 0x890   :  { %2228 = vmatprep.subr.bf16.mxu0 %v3150_v13  ;;  %3037 = vmatprep.subr.bf16.mxu1 %v4549_v62 }
 0x893   :  { %2229 = vmatpush1.bf16.msra.mxu0 %v3148_v7  ;;  %3038 = vmatpush3.bf16.msra.mxu1 %v3151_v9 }
 0x894   :  { %2230 = vmatprep.subr.bf16.mxu0 %v3154_v40  ;;  %3039 = vmatprep.subr.bf16.mxu1 %v4549_v62  ;;  %v2642_v40 = vld [vmem:[%s4521_s7 + $0x1] ss:$2 sm:$0x7] }
 0x897   :  { %2231 = vmatpush1.bf16.msra.mxu0 %v3152_v6  ;;  %3040 = vmatpush3.bf16.msra.mxu1 %v3155_v4 }
 0x898   :  { %2232 = vmatprep.subr.bf16.mxu0 %v3158_v39  ;;  %3041 = vmatprep.subr.bf16.mxu1 %v4549_v62 }
 0x89b   :  { %2233 = vmatpush1.bf16.msra.mxu0 %v3156_v16  ;;  %3042 = vmatpush3.bf16.msra.mxu1 %v3159_v45  ;;  %v4557_v16 = vld [vmem:[#allocation16_spill] sm:$0xff] }
 0x89c   :  { %2234 = vmatprep.subr.bf16.mxu0 %v3162_v44  ;;  %3043 = vmatprep.subr.bf16.mxu1 %v4549_v62  ;;  %v1908_v45 = vunpack.c.l.bf16 %v4557_v16 }
 0x89f   :  { %2235 = vmatpush1.bf16.msra.mxu0 %v3160_v35  ;;  %3044 = vmatpush3.bf16.msra.mxu1 %v3163_v36  ;;  %v4558_v36 = vld [vmem:[#allocation15_spill] sm:$0xff] }
 0x8a0   :  { %2236 = vmatprep.subr.bf16.mxu0 %v3166_v21  ;;  %3045 = vmatprep.subr.bf16.mxu1 %v4549_v62  ;;  %v4559_v21 = vsub.s32 0, %v4558_v36 }
 0x8a3   :  { %2237 = vmatpush1.bf16.msra.mxu0 %v3164_v53  ;;  %3046 = vmatpush3.bf16.msra.mxu1 %v3167_v54  ;;  %v2084_v53 = vrot.slane %v2642_v40, %v4559_v21 }
 0x8a4   :  { %2238 = vmatprep.subr.bf16.mxu0 %v3170_v56  ;;  %3047 = vmatprep.subr.bf16.mxu1 %v4549_v62  ;;  %v3179_v62 = vld [vmem:[#allocation9 + $0x18] sm:$0xff]   ;;  %v1911_v56 = vunpack.c.h.bf16 %v4557_v16 }
 0x8a7   :  { %2239 = vmatpush1.bf16.msra.mxu0 %v3168_v57  ;;  %3048 = vmatpush3.bf16.msra.mxu1 %v3171_v59 }
 0x8a8   :  { %2797 = vmatprep.subr.bf16.mxu0 %v3172_v61 }
 0x8aa   :  { %2257 = vmatmul.mubr.bf16.vlgmr.msra.gmra.mrb[64].mxu0 %v4554_v1  ;;  %3050 = vmatmul.mubr.bf16.vlgmr.msra.gmra.mrb[64].mxu1 %v4554_v1 }
 0x8ab   :  { %2798 = vmatpush3.bf16.msra.mxu0 %v3173_v41  ;;  %v4560_v41 = vsub.s32 1, %v4558_v36 }
 0x8ac   :  { %2799 = vmatprep.subr.bf16.mxu0 %v3174_v12 }
 0x8ad   :  { %v2088_v12 = vrot.slane %v2642_v40, %v4560_v41 }
 0x8af   :  { %2800 = vmatpush3.bf16.msra.mxu0 %v3175_v27 }
 0x8b0   :  { %2801 = vmatprep.subr.bf16.mxu0 %v3176_v50 }
 0x8b3   :  { %2802 = vmatpush3.bf16.msra.mxu0 %v3177_v51 }
 0x8b4   :  { %2803 = vmatprep.subr.bf16.mxu0 %v3178_v24 }
 0x8b7   :  { %2804 = vmatpush3.bf16.msra.mxu0 %v3179_v62 }
 0x8b8   :  { %2805 = vmatprep.subr.bf16.mxu0 %v3180_v15 }
 0x8bb   :  { %2806 = vmatpush3.bf16.msra.mxu0 %v3181_v49 }
 0x8bc   :  { %2807 = vmatprep.subr.bf16.mxu0 %v3182_v17 }
 0x8bf   :  { %2808 = vmatpush3.bf16.msra.mxu0 %v3183_v63 }
 0x8c0   :  { %2809 = vmatprep.subr.bf16.mxu0 %v3184_v28 }
 0x8c3   :  { %2810 = vmatpush3.bf16.msra.mxu0 %v3185_v19 }
 0x8c4   :  { %2811 = vmatprep.subr.bf16.mxu0 %v3186_v29 }
 0x8c7   :  { %2812 = vmatpush3.bf16.msra.mxu0 %v3187_v42 }
 0x95d   :  { %v1947_v55 = vpop.f32.mrb[60].mxu0  ;;  %v2018_v18 = vpop.f32.mrb[60].mxu1 }
 0x95e   :  { %v1956_v5 = vadd.f32 %v1947_v55, %v1906_v52  ;;  %v1949_v58 = vpop.f32.mrb[61].mxu0  ;;  %v3031_v10 = vpop.f32.mrb[61].mxu1  ;;  %v2019_v6 = vadd.f32 %v4457_v8, %v2018_v18 }
 0x95f   :  { %v1970_v14 = vadd.f32 %v1949_v58, %v1907_v3  ;;  %v1951_v0 = vpop.f32.mrb[62].mxu0  ;;  %v2021_v38 = vpop.f32.mrb[62].mxu1 }
 0x960   :  { %v2638_v20 = vmul.f32 -1.442695, %v1956_v5  ;;  %v1957_v48 = vadd.f32 %v1951_v0, %v1909_v11  ;;  %v1953_v32 = vpop.f32.mrb[63].mxu0  ;;  %v3032_v37 = vpop.f32.mrb[63].mxu1  ;;  %v2022_v35 = vadd.f32 %v4457_v8, %v2021_v38 }
 0x961   :  { %v1971_v2 = vadd.f32 %v1953_v32, %v1910_v47  ;;  %v2640_v30 = vmul.f32 -1.442695, %v1970_v14 }
 0x962   :  { %3328 = vpow2.f32 %v2638_v20  ;;  %v2639_v23 = vmul.f32 -1.442695, %v1957_v48 }
 0x963   :  { %v2641_v34 = vmul.f32 -1.442695, %v1971_v2 }
 0x964   :  { %3330 = vpow2.f32 %v2639_v23 }
 0x965   :  { %3332 = vpow2.f32 %v2640_v30  ;;  %v4561_v30 = vsub.s32 2, %v4558_v36 }
 0x966   :  { %3334 = vpow2.f32 %v2641_v34 }
 0x967   :  { %v2092_v34 = vrot.slane %v2642_v40, %v4561_v30 }
 0x96c   :  { %v3329_v46 = vpop.eup %3328 }
 0x96d   :  { %v1964_v33 = vadd.f32 1.0, %v3329_v46  ;;  %v2671_v46 = vld [vmem:[%s4522_s8 + $0x2] ss:$0 sm:$0xff] }
 0x96e   :  { %v3331_v22 = vpop.eup %3330 }
 0x96f   :  { %3336 = vrcp.f32 %v1964_v33  ;;  %v1965_v31 = vadd.f32 1.0, %v3331_v22  ;;  %v3333_v13 = vpop.eup %3332 }
 0x970   :  { %v3335_v7 = vpop.eup %3334  ;;  %v1978_v9 = vadd.f32 1.0, %v3333_v13 }
 0x971   :  { %3338 = vrcp.f32 %v1965_v31  ;;  %v1979_v4 = vadd.f32 1.0, %v3335_v7 }
 0x972   :  { %3340 = vrcp.f32 %v1978_v9 }
 0x973   :  { %3342 = vrcp.f32 %v1979_v4 }
 0x979   :  { %v3337_v39 = vpop.eup %3336 }
 0x97a   :  { %v2025_v44 = vmul.f32 %v3337_v39, %v2019_v6 }
 0x97b   :  { %v3339_v54 = vpop.eup %3338 }
 0x97c   :  { %v2027_v57 = vadd.f32 %v2025_v44, %v1908_v45  ;;  %v2026_v59 = vmul.f32 %v3339_v54, %v2022_v35  ;;  %v3341_v42 = vpop.eup %3340 }
 0x97d   :  { %v2258_v1 = vpop.f32.mrb[64].mxu0  ;;  %v2301_v61 = vpop.f32.mrb[64].mxu1  ;;  %v2031_v18 = vsub.f32 1.0, %v3341_v42  ;;  %v2035_v58 = vmul.f32 %v3341_v42, %v4465_v25 }
 0x97e   :  { %3344 = vtanh.f32 %v2027_v57  ;;  %v2028_v27 = vadd.f32 %v2026_v59, %v1911_v56  ;;  %v2259_v50 = vadd.f32 %v2258_v1, %v2084_v53  ;;  %v2260_v51 = vpop.f32.mrb[65].mxu0  ;;  %v3051_v24 = vpop.f32.mrb[65].mxu1  ;;  %v2302_v22 = vadd.f32 %v2301_v61, %v2092_v34  ;;  %v2672_v56 = vld [vmem:[%s4522_s8 + $0x3] ss:$0 sm:$0xff] }
 0x97f   :  { %v2262_v8 = vpop.f32.mrb[66].mxu0  ;;  %v2304_v62 = vpop.f32.mrb[66].mxu1  ;;  %v2261_v28 = vadd.f32 %v2260_v51, %v2088_v12 }
 0x980   :  { %3346 = vtanh.f32 %v2028_v27  ;;  %v2667_v15 = vmul.f32 -1.442695, %v2259_v50  ;;  %v2263_v49 = vadd.f32 %v2262_v8, %v2084_v53  ;;  %v2264_v17 = vpop.f32.mrb[67].mxu0  ;;  %v3052_v63 = vpop.f32.mrb[67].mxu1  ;;  %v2305_v9 = vadd.f32 %v2304_v62, %v2092_v34 }
 0x981   :  { %v2265_v29 = vadd.f32 %v2264_v17, %v2088_v12  ;;  %v2669_v26 = vmul.f32 -1.442695, %v2261_v28  ;;  %v3343_v52 = vpop.eup %3342 }
 0x982   :  { %3348 = vpow2.f32 %v2667_v15  ;;  %v2668_v19 = vmul.f32 -1.442695, %v2263_v49  ;;  %v2032_v3 = vsub.f32 1.0, %v3343_v52  ;;  %v2036_v14 = vmul.f32 %v3343_v52, %v4467_v43 }
 0x983   :  { %v2670_v55 = vmul.f32 -1.442695, %v2265_v29 }
 0x984   :  { %3350 = vpow2.f32 %v2668_v19 }
 0x985   :  { %3352 = vpow2.f32 %v2669_v26 }
 0x986   :  { %3354 = vpow2.f32 %v2670_v55 }
 0x988   :  { %v3345_v60 = vpop.eup %3344 }
 0x989   :  { %v2033_v5 = vmul.f32 %v3345_v60, %v2031_v18 }
 0x98a   :  { %v3347_v10 = vpop.eup %3346 }
 0x98b   :  { %v2034_v11 = vmul.f32 %v3347_v10, %v2032_v3  ;;  %v2037_v0 = vadd.f32 %v2035_v58, %v2033_v5 }
 0x98c   :  { %v3349_v38 = vpop.eup %3348 }
 0x98d   :  { %v2314_v47 = vadd.f32 1.0, %v3349_v38  ;;  %v2038_v20 = vadd.f32 %v2036_v14, %v2034_v11 }
 0x98e   :  { %v3351_v48 = vpop.eup %3350 }
 0x98f   :  { %3356 = vrcp.f32 %v2314_v47  ;;  %v2315_v32 = vadd.f32 1.0, %v3351_v48  ;;  %v2347_v37 = vpack.c.bf16 %v2038_v20, %v2037_v0  ;;  %v3353_v2 = vpop.eup %3352 }
 0x990   :  { %v3355_v23 = vpop.eup %3354  ;;  %v2326_v25 = vadd.f32 1.0, %v3353_v2 }
 0x991   :  { %3358 = vrcp.f32 %v2315_v32  ;;  %v2327_v43 = vadd.f32 1.0, %v3355_v23 }
 0x992   :  { %3360 = vrcp.f32 %v2326_v25 }
 0x993   :  { %3362 = vrcp.f32 %v2327_v43 }
 0x999   :  { %v3357_v33 = vpop.eup %3356 }
 0x99a   :  { %v2337_v31 = vmul.f32 %v3357_v33, %v2671_v46 }
 0x99b   :  { %v3359_v13 = vpop.eup %3358 }
 0x99c   :  { %v2339_v7 = vadd.f32 %v2337_v31, %v2302_v22  ;;  %v2338_v6 = vmul.f32 %v3359_v13, %v2671_v46  ;;  %v3361_v39 = vpop.eup %3360 }
 0x99d   :  { %v3363_v40 = vpop.eup %3362  ;;  %v2343_v16 = vsub.f32 1.0, %v3361_v39 }
 0x99e   :  { %3364 = vtanh.f32 %v2339_v7  ;;  %v2340_v4 = vadd.f32 %v2338_v6, %v2305_v9  ;;  %v2344_v44 = vsub.f32 1.0, %v3363_v40 }
 0x9a0   :  { %3366 = vtanh.f32 %v2340_v4 }
 0x9a8   :  { %v3365_v45 = vpop.eup %3364 }
 0x9a9   :  { %v2345_v35 = vmul.f32 %v3365_v45, %v2343_v16 }
 0x9aa   :  { %v3367_v36 = vpop.eup %3366 }
 0x9ab   :  { %v2346_v21 = vmul.f32 %v3367_v36, %v2344_v44 }
 0x9ad   :  { %v2348_v53 = vpack.c.bf16 %v2346_v21, %v2345_v35 }
 0x9af   :  { %2514 = vmatprep.mubr.bf16.mxu0 %v2348_v53 }
 0x9b0   :  { %2515 = vmatmul.mubr.bf16.vlgmr.msra.gmra.mrb[68].mxu0 %v2347_v37 }
 0xa83   :  { %v2813_v54 = vpop.f32.mrb[68].mxu0 }
 0xa84   :  { %v2814_v57 = vpop.f32.mrb[69].mxu0 }
 0xa85   :  { %v2815_v59 = vadd.f32 %v2814_v57, %v2813_v54  ;;  %v2816_v1 = vpop.f32.mrb[70].mxu0 }
 0xa86   :  { %v2817_v61 = vpop.f32.mrb[71].mxu0 }
 0xa87   :  { %v2517_v41 = vadd.f32 %v2815_v59, %v2672_v56  ;;  %v2818_v12 = vadd.f32 %v2817_v61, %v2816_v1 }
 0xa89   :  { %3368 = vtanh.f32 %v2517_v41  ;;  %v2520_v27 = vadd.f32 %v2818_v12, %v2672_v56 }
 0xa8b   :  { %3370 = vtanh.f32 %v2520_v27 }
 0xa93   :  { %v3369_v50 = vpop.eup %3368 }
 0xa94   :  { %2525 = vst [vmem:[%s4523_s9] sm:$0xff] %v3369_v50 }
 0xa95   :  { %v3371_v51 = vpop.eup %3370 }
 0xa96   :  { %2526 = vst [vmem:[%s4523_s9 + $0x8] sm:$0xff] %v3371_v51 }
 0xa97   :  { %2531 = vsyncpa [#allocation5], 1 }
 0xa98   :  { %2532 = vsyncpa [#allocation7], 1 }
 0xa99   :  { %2533 = vsyncpa [#allocation10], 1 }

</bundles_post_ra>
